<compile_context>
chip_gen: v6e
topology: v6e:2x2x1
jax: 0.10.0
libtpu: 0.0.40
codegen_flags: <defaults>
</compile_context>

<pallas_src>
import functools

import jax
import jax.numpy as jnp
from jax import lax
from jax.experimental import pallas as pl
from jax.experimental.pallas import tpu as pltpu


def _round_up(x, m):
    return (x + m - 1) // m * m


def _pick_tile(m_pad, cap=1024):
    """Largest tile <= cap that divides m_pad, preferring >=2 grid steps along M."""
    target = max(m_pad // 2, 16)
    for t in (1024, 512, 256, 128, 64, 32, 16):
        if t <= cap and t <= target and m_pad % t == 0:
            return t
    return m_pad  # m_pad is always a multiple of 16


# ----------------------------- Pallas kernels ------------------------------ #

def mm_kernel(p_ref, w_ref, o_ref):
    """One M-tile: patches @ W. bf16 x bf16 -> f32 accumulate -> bf16 store."""
    acc = jnp.dot(p_ref[...], w_ref[...], preferred_element_type=jnp.float32)
    o_ref[...] = acc.astype(o_ref.dtype)


def mm_stats_kernel(p_ref, w_ref, o_ref, sum_ref, sq_ref):
    """Matmul with fused per-channel sum / sum-of-squares (per-core partial rows,
    revisited over the M grid axis) for a BatchNorm folded into the consumer."""
    @pl.when(pl.program_id(1) == 0)
    def _():
        sum_ref[...] = jnp.zeros_like(sum_ref)
        sq_ref[...] = jnp.zeros_like(sq_ref)

    acc = jnp.dot(p_ref[...], w_ref[...], preferred_element_type=jnp.float32)
    sum_ref[...] += jnp.sum(acc, axis=0, keepdims=True)[None]
    sq_ref[...] += jnp.sum(acc * acc, axis=0, keepdims=True)[None]
    o_ref[...] = acc.astype(o_ref.dtype)


def convt_mm_kernel(p_ref, w_ref, b_ref, o_ref, *, post_tanh):
    """One (parity, M-tile): patches @ W + b, optional fused Tanh."""
    acc = jnp.dot(p_ref[0], w_ref[0], preferred_element_type=jnp.float32)
    acc = acc + b_ref[...]
    if post_tanh:
        acc = jnp.tanh(acc)
    o_ref[...] = acc[None].astype(o_ref.dtype)


def convt_mm_stats_kernel(p_ref, w_ref, o_ref, sum_ref, sq_ref):
    """(parity, M-tile) matmul with per-parity stats rows (no cross-core races)."""
    @pl.when(pl.program_id(1) == 0)
    def _():
        sum_ref[...] = jnp.zeros_like(sum_ref)
        sq_ref[...] = jnp.zeros_like(sq_ref)

    acc = jnp.dot(p_ref[0], w_ref[0], preferred_element_type=jnp.float32)
    sum_ref[...] += jnp.sum(acc, axis=0, keepdims=True)[None]
    sq_ref[...] += jnp.sum(acc * acc, axis=0, keepdims=True)[None]
    o_ref[...] = acc[None].astype(o_ref.dtype)


# --------------------------- pallas_call wrappers --------------------------- #

def pallas_conv_matmul(patches, wmat, *, want_stats):
    """patches (M,K) bf16 @ wmat (K,Cout) bf16 -> bf16 (M_pad, C_pad).

    With want_stats also returns per-(padded)-channel (sum, sum_sq) partial rows of
    shape (cores, 1, C_pad), accumulated over the M grid axis per core."""
    M, K = patches.shape
    Cout = wmat.shape[1]
    M_pad = _round_up(M, 16)
    K_pad = _round_up(K, 128)
    C_pad = _round_up(Cout, 128)

    p = jnp.pad(patches, ((0, M_pad - M), (0, K_pad - K)))
    w = jnp.pad(wmat, ((0, K_pad - K), (0, C_pad - Cout)))

    tm = _pick_tile(M_pad)
    mt = M_pad // tm

    if not want_stats:
        return pl.pallas_call(
            mm_kernel,
            out_shape=jax.ShapeDtypeStruct((M_pad, C_pad), jnp.bfloat16),
            grid=(mt,),
            in_specs=[pl.BlockSpec((tm, K_pad), lambda i: (i, 0)),
                      pl.BlockSpec((K_pad, C_pad), lambda i: (0, 0))],
            out_specs=pl.BlockSpec((tm, C_pad), lambda i: (i, 0)),
            compiler_params=pltpu.CompilerParams(
                dimension_semantics=("parallel",)),
        )(p, w)

    # BN-bearing convs are bias-free, so zero-padded patch rows contribute exactly 0
    # to sum / sum-of-squares.  Leading "parallel" core axis keeps v7x's 2 TCs busy;
    # per-core partial stats rows are combined on the host.
    gc = 2 if mt % 2 == 0 else 1
    mt2 = mt // gc
    return pl.pallas_call(
        mm_stats_kernel,
        out_shape=(jax.ShapeDtypeStruct((M_pad, C_pad), jnp.bfloat16),
                   jax.ShapeDtypeStruct((gc, 1, C_pad), jnp.float32),
                   jax.ShapeDtypeStruct((gc, 1, C_pad), jnp.float32)),
        grid=(gc, mt2),
        in_specs=[pl.BlockSpec((tm, K_pad), lambda c, i: (c * mt2 + i, 0)),
                  pl.BlockSpec((K_pad, C_pad), lambda c, i: (0, 0))],
        out_specs=(pl.BlockSpec((tm, C_pad), lambda c, i: (c * mt2 + i, 0)),
                   pl.BlockSpec((1, 1, C_pad), lambda c, i: (c, 0, 0)),
                   pl.BlockSpec((1, 1, C_pad), lambda c, i: (c, 0, 0))),
        compiler_params=pltpu.CompilerParams(
            dimension_semantics=("parallel", "arbitrary")),
    )(p, w)


def pallas_convt_matmul(patches4, wmat4, bias, *, want_stats, post_tanh=False):
    """All 4 ConvT output-parities in ONE call: (4,M,K) bf16 @ (4,K,Cout) bf16."""
    _, M, K = patches4.shape
    Cout = wmat4.shape[2]
    M_pad = _round_up(M, 16)
    K_pad = _round_up(K, 128)
    C_pad = _round_up(Cout, 128)

    p = jnp.pad(patches4, ((0, 0), (0, M_pad - M), (0, K_pad - K)))
    w = jnp.pad(wmat4, ((0, 0), (0, K_pad - K), (0, C_pad - Cout)))

    tm = _pick_tile(M_pad)
    mt = M_pad // tm

    if want_stats:
        return pl.pallas_call(
            convt_mm_stats_kernel,
            out_shape=(jax.ShapeDtypeStruct((4, M_pad, C_pad), jnp.bfloat16),
                       jax.ShapeDtypeStruct((4, 1, C_pad), jnp.float32),
                       jax.ShapeDtypeStruct((4, 1, C_pad), jnp.float32)),
            grid=(4, mt),
            in_specs=[pl.BlockSpec((1, tm, K_pad), lambda pi, i: (pi, i, 0)),
                      pl.BlockSpec((1, K_pad, C_pad), lambda pi, i: (pi, 0, 0))],
            out_specs=(pl.BlockSpec((1, tm, C_pad), lambda pi, i: (pi, i, 0)),
                       pl.BlockSpec((1, 1, C_pad), lambda pi, i: (pi, 0, 0)),
                       pl.BlockSpec((1, 1, C_pad), lambda pi, i: (pi, 0, 0))),
            compiler_params=pltpu.CompilerParams(
                dimension_semantics=("parallel", "arbitrary")),
        )(p, w)

    b = jnp.zeros((Cout,), jnp.float32) if bias is None else bias.astype(jnp.float32)
    b = jnp.pad(b, (0, C_pad - Cout)).reshape(1, C_pad)
    out_dtype = jnp.float32 if post_tanh else jnp.bfloat16
    return pl.pallas_call(
        functools.partial(convt_mm_kernel, post_tanh=post_tanh),
        out_shape=jax.ShapeDtypeStruct((4, M_pad, C_pad), out_dtype),
        grid=(4, mt),
        in_specs=[pl.BlockSpec((1, tm, K_pad), lambda pi, i: (pi, i, 0)),
                  pl.BlockSpec((1, K_pad, C_pad), lambda pi, i: (pi, 0, 0)),
                  pl.BlockSpec((1, C_pad), lambda pi, i: (0, 0))],
        out_specs=pl.BlockSpec((1, tm, C_pad), lambda pi, i: (pi, i, 0)),
        compiler_params=pltpu.CompilerParams(
            dimension_semantics=("parallel", "parallel")),
    )(p, w, b)


# ------------------------------- JAX glue ----------------------------------- #
# An activation is carried as {"raw": NHWC bf16, "scale": (C,), "shift": (C,)} where
# the actual tensor is raw * scale + shift per channel (pending folded BatchNorm).
# scale/shift of None mean identity.

def _bn_fold(stat_sum, stat_sq, count, gamma, beta):
    s = jnp.sum(stat_sum, axis=(0, 1))
    q = jnp.sum(stat_sq, axis=(0, 1))
    cout = gamma.shape[0]
    mean = s[:cout] / count
    var = jnp.maximum(q[:cout] / count - mean * mean, 0.0)  # biased (PyTorch train BN)
    scale = gamma / jnp.sqrt(var + 1e-5)
    shift = beta - mean * scale
    return scale, shift


def _apply_affine_act(act, kind):
    """Pending BN affine + LeakyReLU/ReLU applied to the small x tensor (XLA fuses
    this into the im2col gather — 1x work instead of per-patch work)."""
    x = act["raw"].astype(jnp.float32)
    if act["scale"] is not None:
        x = x * act["scale"] + act["shift"]
    if kind == "lrelu":
        x = jnp.where(x >= 0.0, x, 0.2 * x)
    elif kind == "relu":
        x = jnp.maximum(x, 0.0)
    return x.astype(jnp.bfloat16)


def _im2col_conv_s2(xb):
    """x (N,H,W,C) bf16 -> patches (N*H/2*W/2, 16*C) for Conv2d(k=4, s=2, p=1)."""
    N, H, W, C = xb.shape
    hout, wout = H // 2, W // 2
    xp = jnp.pad(xb, ((0, 0), (1, 1), (1, 1), (0, 0)))
    cols = [xp[:, i:i + 2 * hout:2, j:j + 2 * wout:2, :]
            for i in range(4) for j in range(4)]
    patches = jnp.stack(cols, axis=3).reshape(N * hout * wout, 16 * C)
    return patches, hout, wout


# ConvTranspose2d(k=4,s=2,p=1): output (2qy+py, 2qx+px) only receives input rows
# {qy-1,qy} (py=0) or {qy,qy+1} (py=1) with kernel taps ky in (3,1) / (2,0)
# respectively (same along x) -> 4 independent 2x2-tap convs, K = 4*Cin each.
_T_TAPS = ((3, 1), (2, 0))


def _im2col_convt_parity(xb, py, px):
    N, H, W, C = xb.shape
    pad_y = (1, 0) if py == 0 else (0, 1)
    pad_x = (1, 0) if px == 0 else (0, 1)
    xp = jnp.pad(xb, ((0, 0), pad_y, pad_x, (0, 0)))
    cols = [xp[:, dy:dy + H, dx:dx + W, :] for dy in range(2) for dx in range(2)]
    return jnp.stack(cols, axis=3).reshape(N * H * W, 4 * C)


def _convt_parity_weight(w_iohw, py, px):
    """torch ConvT weight (Cin,Cout,4,4) -> (4*Cin, Cout) sub-kernel for parity."""
    rows = []
    for ky in _T_TAPS[py]:
        for kx in _T_TAPS[px]:
            rows.append(w_iohw[:, :, ky, kx])            # (Cin, Cout)
    return jnp.stack(rows, axis=0).reshape(-1, w_iohw.shape[1])


def conv_down(act_in, w_oihw, *, pre_act, bn):
    """[pending-BN affine] -> [LeakyReLU] -> Conv2d(k4,s2,p1,bias=False) [+ BN stats]."""
    x = _apply_affine_act(act_in, pre_act)
    N, H, W, Cin = x.shape
    Cout = w_oihw.shape[0]
    patches, hout, wout = _im2col_conv_s2(x)
    wmat = jnp.transpose(w_oihw, (2, 3, 1, 0)).reshape(16 * Cin, Cout).astype(jnp.bfloat16)
    M = N * hout * wout
    if bn is None:
        y = pallas_conv_matmul(patches, wmat, want_stats=False)
        scale = shift = None
    else:
        y, s, q = pallas_conv_matmul(patches, wmat, want_stats=True)
        scale, shift = _bn_fold(s, q, M, bn["gamma"], bn["beta"])
    y = y[:M, :Cout].reshape(N, hout, wout, Cout)
    return {"raw": y, "scale": scale, "shift": shift}


def convt_up(act_in, w_iohw, bias, *, bn, post_tanh=False):
    """[pending-BN affine] -> ReLU -> ConvTranspose2d(k4,s2,p1) [+ BN stats | +b,Tanh]."""
    x = _apply_affine_act(act_in, "relu")
    N, H, W, Cin = x.shape
    Cout = w_iohw.shape[1]
    M = N * H * W

    patches4 = jnp.stack([_im2col_convt_parity(x, py, px)
                          for py in (0, 1) for px in (0, 1)], axis=0)
    wmat4 = jnp.stack([_convt_parity_weight(w_iohw, py, px)
                       for py in (0, 1) for px in (0, 1)], axis=0).astype(jnp.bfloat16)

    if bn is None:
        y4 = pallas_convt_matmul(patches4, wmat4, bias, want_stats=False,
                                 post_tanh=post_tanh)
        scale = shift = None
    else:
        y4, s, q = pallas_convt_matmul(patches4, wmat4, None, want_stats=True)
        scale, shift = _bn_fold(s, q, 4 * M, bn["gamma"], bn["beta"])

    y4 = y4[:, :M, :Cout].reshape(2, 2, N, H, W, Cout)        # (py, px, N, H, W, C)
    y = jnp.transpose(y4, (2, 3, 0, 4, 1, 5)).reshape(N, 2 * H, 2 * W, Cout)
    return {"raw": y, "scale": scale, "shift": shift}


# ------------------------- UnetSkipConnectionBlock --------------------------- #

def unet_block_forward(act_in, p):
    """act_in: {"raw","scale","shift"}. Mirrors UnetSkipConnectionBlock.forward."""
    if p["outermost"]:
        h = conv_down(act_in, p["down_w"], pre_act=None, bn=None)
    else:
        h = conv_down(act_in, p["down_w"], pre_act="lrelu", bn=p["downnorm"])
    if p["submodule"] is not None:
        h = unet_block_forward(h, p["submodule"])
    if p["outermost"]:
        return convt_up(h, p["up_w"], p["up_b"], bn=None, post_tanh=True)
    u = convt_up(h, p["up_w"], None, bn=p["upnorm"])
    # torch.cat([x, model(x)], 1): concat raw tensors and their pending BN affines.
    Cx = act_in["raw"].shape[-1]
    x_scale = act_in["scale"] if act_in["scale"] is not None else jnp.ones((Cx,), jnp.float32)
    x_shift = act_in["shift"] if act_in["shift"] is not None else jnp.zeros((Cx,), jnp.float32)
    return {"raw": jnp.concatenate([act_in["raw"], u["raw"]], axis=-1),
            "scale": jnp.concatenate([x_scale, u["scale"]]),
            "shift": jnp.concatenate([x_shift, u["shift"]])}


def unet_forward(x_nchw, params):
    x = jnp.transpose(x_nchw, (0, 2, 3, 1)).astype(jnp.bfloat16)   # NCHW -> NHWC
    act = {"raw": x, "scale": None, "shift": None}
    out = unet_block_forward(act, params)
    return jnp.transpose(out["raw"], (0, 3, 1, 2)).astype(jnp.float32)


def build_unet_block_params(key, outer_nc, inner_nc, input_nc=None, submodule=None,
                            outermost=False, innermost=False):
    """Mirror UnetSkipConnectionBlock.__init__ with norm_layer=BatchNorm2d (use_bias=False)."""
    if input_nc is None:
        input_nc = outer_nc
    ks = jax.random.split(key, 7)
    p = dict(outermost=outermost, innermost=innermost, submodule=submodule)
    p["down_w"] = 0.02 * jax.random.normal(ks[0], (inner_nc, input_nc, 4, 4), jnp.float32)
    p["downnorm"] = None
    if not outermost and not innermost:
        p["downnorm"] = dict(
            gamma=1.0 + 0.02 * jax.random.normal(ks[1], (inner_nc,), jnp.float32),
            beta=0.02 * jax.random.normal(ks[2], (inner_nc,), jnp.float32))
    up_in = inner_nc if innermost else inner_nc * 2
    p["up_w"] = 0.02 * jax.random.normal(ks[3], (up_in, outer_nc, 4, 4), jnp.float32)
    p["up_b"] = (0.01 * jax.random.normal(ks[4], (outer_nc,), jnp.float32)
                 if outermost else None)
    p["upnorm"] = None
    if not outermost:
        p["upnorm"] = dict(
            gamma=1.0 + 0.02 * jax.random.normal(ks[5], (outer_nc,), jnp.float32),
            beta=0.02 * jax.random.normal(ks[6], (outer_nc,), jnp.float32))
    return p


# ------------------------------ pure-JAX reference --------------------------- #

def _ref_act(x, kind):
    if kind == "lrelu":
        return jnp.where(x >= 0.0, x, 0.2 * x)
    if kind == "relu":
        return jnp.maximum(x, 0.0)
    return x


def _ref_conv_s2(x, w_oihw):
    w = jnp.transpose(w_oihw, (2, 3, 1, 0)).astype(jnp.bfloat16)
    return lax.conv_general_dilated(
        x.astype(jnp.bfloat16), w, window_strides=(2, 2), padding=[(1, 1), (1, 1)],
        dimension_numbers=("NHWC", "HWIO", "NHWC"),
        preferred_element_type=jnp.float32)


def _ref_convt_s2(x, w_iohw, b):
    w = jnp.transpose(w_iohw[:, :, ::-1, ::-1], (2, 3, 0, 1)).astype(jnp.bfloat16)
    y = lax.conv_general_dilated(
        x.astype(jnp.bfloat16), w, window_strides=(1, 1), padding=[(2, 2), (2, 2)],
        lhs_dilation=(2, 2), dimension_numbers=("NHWC", "HWIO", "NHWC"),
        preferred_element_type=jnp.float32)
    if b is not None:
        y = y + b
    return y


def _ref_bn(y, bn):
    mean = jnp.mean(y, axis=(0, 1, 2))
    var = jnp.var(y, axis=(0, 1, 2))
    return (y - mean) / jnp.sqrt(var + 1e-5) * bn["gamma"] + bn["beta"]


def reference_block(x, p):
    if p["outermost"]:
        h = _ref_conv_s2(x, p["down_w"])
    else:
        h = _ref_conv_s2(_ref_act(x, "lrelu"), p["down_w"])
        if p["downnorm"] is not None:
            h = _ref_bn(h, p["downnorm"])
    if p["submodule"] is not None:
        h = reference_block(h, p["submodule"])
    y = _ref_convt_s2(_ref_act(h, "relu"), p["up_w"], p["up_b"])
    if p["outermost"]:
        return jnp.tanh(y)
    y = _ref_bn(y, p["upnorm"])
    return jnp.concatenate([x, y], axis=-1)


def reference_forward(x_nchw, params):
    x = jnp.transpose(x_nchw, (0, 2, 3, 1)).astype(jnp.float32)
    y = reference_block(x, params)
    return jnp.transpose(y, (0, 3, 1, 2))


# ----------------------------------- main ------------------------------------ #

if __name__ == "__main__":
    key = jax.random.PRNGKey(0)
    kx, k_in, k_mid, k_out = jax.random.split(key, 4)

    # Small 3-level nesting of UnetSkipConnectionBlocks: innermost / middle / outermost.
    N, C, H, W = 2, 3, 16, 16
    ngf = 16
    inner = build_unet_block_params(k_in, outer_nc=2 * ngf, inner_nc=4 * ngf,
                                    innermost=True)
    middle = build_unet_block_params(k_mid, outer_nc=ngf, inner_nc=2 * ngf,
                                     submodule=inner)
    outer = build_unet_block_params(k_out, outer_nc=3, inner_nc=ngf, input_nc=C,
                                    submodule=middle, outermost=True)

    x = jax.random.normal(kx, (N, C, H, W), jnp.float32)

    fwd = jax.jit(lambda xx: unet_forward(xx, outer))
    out = jax.block_until_ready(fwd(x))
    ref = reference_forward(x, outer)

    assert out.shape == ref.shape == (N, 3, H, W), (out.shape, ref.shape)
    # bf16 intermediate activations vs the f32-intermediate reference => slightly
    # looser tolerance than a pure-f32 pipeline.
    err = float(jnp.max(jnp.abs(out - ref)))
    if not err < 2e-2:
        raise AssertionError(f"Pallas vs reference mismatch: max abs err = {err}")

    print("KERNEL_OK")
</pallas_src>

<mosaic_0001>
module attributes {stable_mosaic.version = 11 : i64} {
  func.func @mm_kernel(%arg0: i32, %arg1: memref<64x128xbf16, #tpu.memory_space<vmem>>, %arg2: memref<128x128xbf16, #tpu.memory_space<vmem>>, %arg3: memref<64x128xbf16, #tpu.memory_space<vmem>>) attributes {dimension_semantics = [#tpu.dimension_semantics<parallel>], iteration_bounds = array<i64: 2>, scalar_prefetch = 0 : i64, scratch_operands = 0 : i64, tpu.core_type = #tpu.core_type<tc>, window_params = [{transform_indices = @transform_0, window_bounds = array<i64: 64, 128>}, {pipeline_mode = #tpu.pipeline_mode<synchronous>, transform_indices = @transform_1, window_bounds = array<i64: 128, 128>}, {transform_indices = @transform_2, window_bounds = array<i64: 64, 128>}]} {
    %c0 = arith.constant 0 : index
    %c0_0 = arith.constant 0 : index
    %0 = vector.load %arg1[%c0, %c0_0] : memref<64x128xbf16, #tpu.memory_space<vmem>>, vector<64x128xbf16>
    %c0_1 = arith.constant 0 : index
    %c0_2 = arith.constant 0 : index
    %1 = vector.load %arg2[%c0_1, %c0_2] : memref<128x128xbf16, #tpu.memory_space<vmem>>, vector<128x128xbf16>
    %cst = arith.constant dense<0.000000e+00> : vector<64x128xf32>
    %2 = tpu.matmul %0, %1, %cst {dimension_numbers = #tpu.dot_dimension_numbers<[1], [0], [0], [1], [0, 0, 1, 1], [], []>} : vector<64x128xbf16>, vector<128x128xbf16>, vector<64x128xf32> -> vector<64x128xf32>
    %3 = arith.truncf %2 : vector<64x128xf32> to vector<64x128xbf16>
    %c0_3 = arith.constant 0 : index
    %c0_4 = arith.constant 0 : index
    %4 = vector.load %arg3[%c0_3, %c0_4] : memref<64x128xbf16, #tpu.memory_space<vmem>>, vector<64x128xbf16>
    tpu.vector_store %arg3[%c0_3, %c0_4], %3 {strides = array<i32>} : memref<64x128xbf16, #tpu.memory_space<vmem>>, vector<64x128xbf16>,
    return
  }
  func.func @transform_0(%arg0: i32) -> (i32, i32) {
    %c0_i32 = arith.constant 0 : i32
    %c0_i32_0 = arith.constant 0 : i32
    return %arg0, %c0_i32 : i32, i32
  }
  func.func @transform_1(%arg0: i32) -> (i32, i32) {
    %c0_i32 = arith.constant 0 : i32
    %c0_i32_0 = arith.constant 0 : i32
    %c0_i32_1 = arith.constant 0 : i32
    return %c0_i32, %c0_i32_0 : i32, i32
  }
  func.func @transform_2(%arg0: i32) -> (i32, i32) {
    %c0_i32 = arith.constant 0 : i32
    %c0_i32_0 = arith.constant 0 : i32
    return %arg0, %c0_i32 : i32, i32
  }
}

module attributes {stable_mosaic.version = 11 : i64} {
  func.func @mm_stats_kernel(%arg0: i32, %arg1: i32, %arg2: memref<16x256xbf16, #tpu.memory_space<vmem>>, %arg3: memref<256x128xbf16, #tpu.memory_space<vmem>>, %arg4: memref<16x128xbf16, #tpu.memory_space<vmem>>, %arg5: memref<1x1x128xf32, #tpu.memory_space<vmem>>, %arg6: memref<1x1x128xf32, #tpu.memory_space<vmem>>) attributes {dimension_semantics = [#tpu.dimension_semantics<parallel>, #tpu.dimension_semantics<arbitrary>], iteration_bounds = array<i64: 2, 1>, scalar_prefetch = 0 : i64, scratch_operands = 0 : i64, tpu.core_type = #tpu.core_type<tc>, window_params = [{transform_indices = @transform_0, window_bounds = array<i64: 16, 256>}, {pipeline_mode = #tpu.pipeline_mode<synchronous>, transform_indices = @transform_1, window_bounds = array<i64: 256, 128>}, {transform_indices = @transform_2, window_bounds = array<i64: 16, 128>}, {transform_indices = @transform_3, window_bounds = array<i64: 1, 1, 128>}, {transform_indices = @transform_4, window_bounds = array<i64: 1, 1, 128>}]} {
    %c0_i32 = arith.constant 0 : i32
    %0 = arith.cmpi eq, %arg1, %c0_i32 : i32
    %1 = arith.extui %0 : i1 to i32
    %c0_i32_0 = arith.constant 0 : i32
    %2 = arith.cmpi ne, %1, %c0_i32_0 : i32
    scf.if %2 {
      %cst_20 = arith.constant 0.000000e+00 : f32
      %21 = vector.broadcast %cst_20 : f32 to vector<1x1x128xf32>
      %c0_21 = arith.constant 0 : index
      %c0_22 = arith.constant 0 : index
      %c0_23 = arith.constant 0 : index
      %22 = vector.load %arg5[%c0_21, %c0_22, %c0_23] : memref<1x1x128xf32, #tpu.memory_space<vmem>>, vector<1x1x128xf32>
      tpu.vector_store %arg5[%c0_21, %c0_22, %c0_23], %21 {strides = array<i32>} : memref<1x1x128xf32, #tpu.memory_space<vmem>>, vector<1x1x128xf32>,
      %cst_24 = arith.constant 0.000000e+00 : f32
      %23 = vector.broadcast %cst_24 : f32 to vector<1x1x128xf32>
      %c0_25 = arith.constant 0 : index
      %c0_26 = arith.constant 0 : index
      %c0_27 = arith.constant 0 : index
      %24 = vector.load %arg6[%c0_25, %c0_26, %c0_27] : memref<1x1x128xf32, #tpu.memory_space<vmem>>, vector<1x1x128xf32>
      tpu.vector_store %arg6[%c0_25, %c0_26, %c0_27], %23 {strides = array<i32>} : memref<1x1x128xf32, #tpu.memory_space<vmem>>, vector<1x1x128xf32>,
    } else {
    }
    %c0 = arith.constant 0 : index
    %c0_1 = arith.constant 0 : index
    %3 = vector.load %arg2[%c0, %c0_1] : memref<16x256xbf16, #tpu.memory_space<vmem>>, vector<16x256xbf16>
    %c0_2 = arith.constant 0 : index
    %c0_3 = arith.constant 0 : index
    %4 = vector.load %arg3[%c0_2, %c0_3] : memref<256x128xbf16, #tpu.memory_space<vmem>>, vector<256x128xbf16>
    %cst = arith.constant dense<0.000000e+00> : vector<16x128xf32>
    %5 = tpu.matmul %3, %4, %cst {dimension_numbers = #tpu.dot_dimension_numbers<[1], [0], [0], [1], [0, 0, 1, 1], [], []>} : vector<16x256xbf16>, vector<256x128xbf16>, vector<16x128xf32> -> vector<16x128xf32>
    %c0_4 = arith.constant 0 : index
    %c0_5 = arith.constant 0 : index
    %c0_6 = arith.constant 0 : index
    %6 = vector.load %arg5[%c0_4, %c0_5, %c0_6] : memref<1x1x128xf32, #tpu.memory_space<vmem>>, vector<1x1x128xf32>
    %cst_7 = arith.constant dense<0.000000e+00> : vector<128xf32>
    %7 = vector.multi_reduction <add>, %5, %cst_7 [0] : vector<16x128xf32> to vector<128xf32>
    %8 = vector.shape_cast %7 : vector<128xf32> to vector<1x128xf32>
    %9 = vector.shape_cast %8 : vector<1x128xf32> to vector<1x1x128xf32>
    %10 = arith.addf %6, %9 : vector<1x1x128xf32>
    %c0_8 = arith.constant 0 : index
    %c0_9 = arith.constant 0 : index
    %c0_10 = arith.constant 0 : index
    %11 = vector.load %arg5[%c0_8, %c0_9, %c0_10] : memref<1x1x128xf32, #tpu.memory_space<vmem>>, vector<1x1x128xf32>
    tpu.vector_store %arg5[%c0_8, %c0_9, %c0_10], %10 {strides = array<i32>} : memref<1x1x128xf32, #tpu.memory_space<vmem>>, vector<1x1x128xf32>,
    %c0_11 = arith.constant 0 : index
    %c0_12 = arith.constant 0 : index
    %c0_13 = arith.constant 0 : index
    %12 = vector.load %arg6[%c0_11, %c0_12, %c0_13] : memref<1x1x128xf32, #tpu.memory_space<vmem>>, vector<1x1x128xf32>
    %13 = arith.mulf %5, %5 : vector<16x128xf32>
    %cst_14 = arith.constant dense<0.000000e+00> : vector<128xf32>
    %14 = vector.multi_reduction <add>, %13, %cst_14 [0] : vector<16x128xf32> to vector<128xf32>
    %15 = vector.shape_cast %14 : vector<128xf32> to vector<1x128xf32>
    %16 = vector.shape_cast %15 : vector<1x128xf32> to vector<1x1x128xf32>
    %17 = arith.addf %12, %16 : vector<1x1x128xf32>
    %c0_15 = arith.constant 0 : index
    %c0_16 = arith.constant 0 : index
    %c0_17 = arith.constant 0 : index
    %18 = vector.load %arg6[%c0_15, %c0_16, %c0_17] : memref<1x1x128xf32, #tpu.memory_space<vmem>>, vector<1x1x128xf32>
    tpu.vector_store %arg6[%c0_15, %c0_16, %c0_17], %17 {strides = array<i32>} : memref<1x1x128xf32, #tpu.memory_space<vmem>>, vector<1x1x128xf32>,
    %19 = arith.truncf %5 : vector<16x128xf32> to vector<16x128xbf16>
    %c0_18 = arith.constant 0 : index
    %c0_19 = arith.constant 0 : index
    %20 = vector.load %arg4[%c0_18, %c0_19] : memref<16x128xbf16, #tpu.memory_space<vmem>>, vector<16x128xbf16>
    tpu.vector_store %arg4[%c0_18, %c0_19], %19 {strides = array<i32>} : memref<16x128xbf16, #tpu.memory_space<vmem>>, vector<16x128xbf16>,
    return
  }
  func.func @transform_0(%arg0: i32, %arg1: i32) -> (i32, i32) {
    %c1_i32 = arith.constant 1 : i32
    %0 = arith.muli %arg0, %c1_i32 : i32
    %1 = arith.addi %0, %arg1 : i32
    %c0_i32 = arith.constant 0 : i32
    %c0_i32_0 = arith.constant 0 : i32
    return %1, %c0_i32 : i32, i32
  }
  func.func @transform_1(%arg0: i32, %arg1: i32) -> (i32, i32) {
    %c0_i32 = arith.constant 0 : i32
    %c0_i32_0 = arith.constant 0 : i32
    %c0_i32_1 = arith.constant 0 : i32
    return %c0_i32, %c0_i32_0 : i32, i32
  }
  func.func @transform_2(%arg0: i32, %arg1: i32) -> (i32, i32) {
    %c1_i32 = arith.constant 1 : i32
    %0 = arith.muli %arg0, %c1_i32 : i32
    %1 = arith.addi %0, %arg1 : i32
    %c0_i32 = arith.constant 0 : i32
    %c0_i32_0 = arith.constant 0 : i32
    return %1, %c0_i32 : i32, i32
  }
  func.func @transform_3(%arg0: i32, %arg1: i32) -> (i32, i32, i32) {
    %c0_i32 = arith.constant 0 : i32
    %c0_i32_0 = arith.constant 0 : i32
    %c0_i32_1 = arith.constant 0 : i32
    return %arg0, %c0_i32, %c0_i32_0 : i32, i32, i32
  }
  func.func @transform_4(%arg0: i32, %arg1: i32) -> (i32, i32, i32) {
    %c0_i32 = arith.constant 0 : i32
    %c0_i32_0 = arith.constant 0 : i32
    %c0_i32_1 = arith.constant 0 : i32
    return %arg0, %c0_i32, %c0_i32_0 : i32, i32, i32
  }
}

module attributes {stable_mosaic.version = 11 : i64} {
  func.func @mm_kernel(%arg0: i32, %arg1: memref<16x512xbf16, #tpu.memory_space<vmem>>, %arg2: memref<512x128xbf16, #tpu.memory_space<vmem>>, %arg3: memref<16x128xbf16, #tpu.memory_space<vmem>>) attributes {dimension_semantics = [#tpu.dimension_semantics<parallel>], iteration_bounds = array<i64: 1>, scalar_prefetch = 0 : i64, scratch_operands = 0 : i64, tpu.core_type = #tpu.core_type<tc>, window_params = [{transform_indices = @transform_0, window_bounds = array<i64: 16, 512>}, {pipeline_mode = #tpu.pipeline_mode<synchronous>, transform_indices = @transform_1, window_bounds = array<i64: 512, 128>}, {transform_indices = @transform_2, window_bounds = array<i64: 16, 128>}]} {
    %c0 = arith.constant 0 : index
    %c0_0 = arith.constant 0 : index
    %0 = vector.load %arg1[%c0, %c0_0] : memref<16x512xbf16, #tpu.memory_space<vmem>>, vector<16x512xbf16>
    %c0_1 = arith.constant 0 : index
    %c0_2 = arith.constant 0 : index
    %1 = vector.load %arg2[%c0_1, %c0_2] : memref<512x128xbf16, #tpu.memory_space<vmem>>, vector<512x128xbf16>
    %cst = arith.constant dense<0.000000e+00> : vector<16x128xf32>
    %2 = tpu.matmul %0, %1, %cst {dimension_numbers = #tpu.dot_dimension_numbers<[1], [0], [0], [1], [0, 0, 1, 1], [], []>} : vector<16x512xbf16>, vector<512x128xbf16>, vector<16x128xf32> -> vector<16x128xf32>
    %3 = arith.truncf %2 : vector<16x128xf32> to vector<16x128xbf16>
    %c0_3 = arith.constant 0 : index
    %c0_4 = arith.constant 0 : index
    %4 = vector.load %arg3[%c0_3, %c0_4] : memref<16x128xbf16, #tpu.memory_space<vmem>>, vector<16x128xbf16>
    tpu.vector_store %arg3[%c0_3, %c0_4], %3 {strides = array<i32>} : memref<16x128xbf16, #tpu.memory_space<vmem>>, vector<16x128xbf16>,
    return
  }
  func.func @transform_0(%arg0: i32) -> (i32, i32) {
    %c0_i32 = arith.constant 0 : i32
    %c0_i32_0 = arith.constant 0 : i32
    return %arg0, %c0_i32 : i32, i32
  }
  func.func @transform_1(%arg0: i32) -> (i32, i32) {
    %c0_i32 = arith.constant 0 : i32
    %c0_i32_0 = arith.constant 0 : i32
    %c0_i32_1 = arith.constant 0 : i32
    return %c0_i32, %c0_i32_0 : i32, i32
  }
  func.func @transform_2(%arg0: i32) -> (i32, i32) {
    %c0_i32 = arith.constant 0 : i32
    %c0_i32_0 = arith.constant 0 : i32
    return %arg0, %c0_i32 : i32, i32
  }
}

module attributes {stable_mosaic.version = 11 : i64} {
  func.func @convt_mm_stats_kernel(%arg0: i32, %arg1: i32, %arg2: memref<1x16x256xbf16, #tpu.memory_space<vmem>>, %arg3: memref<1x256x128xbf16, #tpu.memory_space<vmem>>, %arg4: memref<1x16x128xbf16, #tpu.memory_space<vmem>>, %arg5: memref<1x1x128xf32, #tpu.memory_space<vmem>>, %arg6: memref<1x1x128xf32, #tpu.memory_space<vmem>>) attributes {dimension_semantics = [#tpu.dimension_semantics<parallel>, #tpu.dimension_semantics<arbitrary>], iteration_bounds = array<i64: 4, 1>, scalar_prefetch = 0 : i64, scratch_operands = 0 : i64, tpu.core_type = #tpu.core_type<tc>, window_params = [{transform_indices = @transform_0, window_bounds = array<i64: 1, 16, 256>}, {transform_indices = @transform_1, window_bounds = array<i64: 1, 256, 128>}, {transform_indices = @transform_2, window_bounds = array<i64: 1, 16, 128>}, {transform_indices = @transform_3, window_bounds = array<i64: 1, 1, 128>}, {transform_indices = @transform_4, window_bounds = array<i64: 1, 1, 128>}]} {
    %c0_i32 = arith.constant 0 : i32
    %0 = arith.cmpi eq, %arg1, %c0_i32 : i32
    %1 = arith.extui %0 : i1 to i32
    %c0_i32_0 = arith.constant 0 : i32
    %2 = arith.cmpi ne, %1, %c0_i32_0 : i32
    scf.if %2 {
      %cst_23 = arith.constant 0.000000e+00 : f32
      %24 = vector.broadcast %cst_23 : f32 to vector<1x1x128xf32>
      %c0_24 = arith.constant 0 : index
      %c0_25 = arith.constant 0 : index
      %c0_26 = arith.constant 0 : index
      %25 = vector.load %arg5[%c0_24, %c0_25, %c0_26] : memref<1x1x128xf32, #tpu.memory_space<vmem>>, vector<1x1x128xf32>
      tpu.vector_store %arg5[%c0_24, %c0_25, %c0_26], %24 {strides = array<i32>} : memref<1x1x128xf32, #tpu.memory_space<vmem>>, vector<1x1x128xf32>,
      %cst_27 = arith.constant 0.000000e+00 : f32
      %26 = vector.broadcast %cst_27 : f32 to vector<1x1x128xf32>
      %c0_28 = arith.constant 0 : index
      %c0_29 = arith.constant 0 : index
      %c0_30 = arith.constant 0 : index
      %27 = vector.load %arg6[%c0_28, %c0_29, %c0_30] : memref<1x1x128xf32, #tpu.memory_space<vmem>>, vector<1x1x128xf32>
      tpu.vector_store %arg6[%c0_28, %c0_29, %c0_30], %26 {strides = array<i32>} : memref<1x1x128xf32, #tpu.memory_space<vmem>>, vector<1x1x128xf32>,
    } else {
    }
    %c0 = arith.constant 0 : index
    %c0_1 = arith.constant 0 : index
    %c0_2 = arith.constant 0 : index
    %3 = vector.load %arg2[%c0, %c0_1, %c0_2] : memref<1x16x256xbf16, #tpu.memory_space<vmem>>, vector<1x16x256xbf16>
    %4 = vector.shape_cast %3 : vector<1x16x256xbf16> to vector<16x256xbf16>
    %c0_3 = arith.constant 0 : index
    %c0_4 = arith.constant 0 : index
    %c0_5 = arith.constant 0 : index
    %5 = vector.load %arg3[%c0_3, %c0_4, %c0_5] : memref<1x256x128xbf16, #tpu.memory_space<vmem>>, vector<1x256x128xbf16>
    %6 = vector.shape_cast %5 : vector<1x256x128xbf16> to vector<256x128xbf16>
    %cst = arith.constant dense<0.000000e+00> : vector<16x128xf32>
    %7 = tpu.matmul %4, %6, %cst {dimension_numbers = #tpu.dot_dimension_numbers<[1], [0], [0], [1], [0, 0, 1, 1], [], []>} : vector<16x256xbf16>, vector<256x128xbf16>, vector<16x128xf32> -> vector<16x128xf32>
    %c0_6 = arith.constant 0 : index
    %c0_7 = arith.constant 0 : index
    %c0_8 = arith.constant 0 : index
    %8 = vector.load %arg5[%c0_6, %c0_7, %c0_8] : memref<1x1x128xf32, #tpu.memory_space<vmem>>, vector<1x1x128xf32>
    %cst_9 = arith.constant dense<0.000000e+00> : vector<128xf32>
    %9 = vector.multi_reduction <add>, %7, %cst_9 [0] : vector<16x128xf32> to vector<128xf32>
    %10 = vector.shape_cast %9 : vector<128xf32> to vector<1x128xf32>
    %11 = vector.shape_cast %10 : vector<1x128xf32> to vector<1x1x128xf32>
    %12 = arith.addf %8, %11 : vector<1x1x128xf32>
    %c0_10 = arith.constant 0 : index
    %c0_11 = arith.constant 0 : index
    %c0_12 = arith.constant 0 : index
    %13 = vector.load %arg5[%c0_10, %c0_11, %c0_12] : memref<1x1x128xf32, #tpu.memory_space<vmem>>, vector<1x1x128xf32>
    tpu.vector_store %arg5[%c0_10, %c0_11, %c0_12], %12 {strides = array<i32>} : memref<1x1x128xf32, #tpu.memory_space<vmem>>, vector<1x1x128xf32>,
    %c0_13 = arith.constant 0 : index
    %c0_14 = arith.constant 0 : index
    %c0_15 = arith.constant 0 : index
    %14 = vector.load %arg6[%c0_13, %c0_14, %c0_15] : memref<1x1x128xf32, #tpu.memory_space<vmem>>, vector<1x1x128xf32>
    %15 = arith.mulf %7, %7 : vector<16x128xf32>
    %cst_16 = arith.constant dense<0.000000e+00> : vector<128xf32>
    %16 = vector.multi_reduction <add>, %15, %cst_16 [0] : vector<16x128xf32> to vector<128xf32>
    %17 = vector.shape_cast %16 : vector<128xf32> to vector<1x128xf32>
    %18 = vector.shape_cast %17 : vector<1x128xf32> to vector<1x1x128xf32>
    %19 = arith.addf %14, %18 : vector<1x1x128xf32>
    %c0_17 = arith.constant 0 : index
    %c0_18 = arith.constant 0 : index
    %c0_19 = arith.constant 0 : index
    %20 = vector.load %arg6[%c0_17, %c0_18, %c0_19] : memref<1x1x128xf32, #tpu.memory_space<vmem>>, vector<1x1x128xf32>
    tpu.vector_store %arg6[%c0_17, %c0_18, %c0_19], %19 {strides = array<i32>} : memref<1x1x128xf32, #tpu.memory_space<vmem>>, vector<1x1x128xf32>,
    %21 = vector.shape_cast %7 : vector<16x128xf32> to vector<1x16x128xf32>
    %22 = arith.truncf %21 : vector<1x16x128xf32> to vector<1x16x128xbf16>
    %c0_20 = arith.constant 0 : index
    %c0_21 = arith.constant 0 : index
    %c0_22 = arith.constant 0 : index
    %23 = vector.load %arg4[%c0_20, %c0_21, %c0_22] : memref<1x16x128xbf16, #tpu.memory_space<vmem>>, vector<1x16x128xbf16>
    tpu.vector_store %arg4[%c0_20, %c0_21, %c0_22], %22 {strides = array<i32>} : memref<1x16x128xbf16, #tpu.memory_space<vmem>>, vector<1x16x128xbf16>,
    return
  }
  func.func @transform_0(%arg0: i32, %arg1: i32) -> (i32, i32, i32) {
    %c0_i32 = arith.constant 0 : i32
    %c0_i32_0 = arith.constant 0 : i32
    return %arg0, %arg1, %c0_i32 : i32, i32, i32
  }
  func.func @transform_1(%arg0: i32, %arg1: i32) -> (i32, i32, i32) {
    %c0_i32 = arith.constant 0 : i32
    %c0_i32_0 = arith.constant 0 : i32
    %c0_i32_1 = arith.constant 0 : i32
    return %arg0, %c0_i32, %c0_i32_0 : i32, i32, i32
  }
  func.func @transform_2(%arg0: i32, %arg1: i32) -> (i32, i32, i32) {
    %c0_i32 = arith.constant 0 : i32
    %c0_i32_0 = arith.constant 0 : i32
    return %arg0, %arg1, %c0_i32 : i32, i32, i32
  }
  func.func @transform_3(%arg0: i32, %arg1: i32) -> (i32, i32, i32) {
    %c0_i32 = arith.constant 0 : i32
    %c0_i32_0 = arith.constant 0 : i32
    %c0_i32_1 = arith.constant 0 : i32
    return %arg0, %c0_i32, %c0_i32_0 : i32, i32, i32
  }
  func.func @transform_4(%arg0: i32, %arg1: i32) -> (i32, i32, i32) {
    %c0_i32 = arith.constant 0 : i32
    %c0_i32_0 = arith.constant 0 : i32
    %c0_i32_1 = arith.constant 0 : i32
    return %arg0, %c0_i32, %c0_i32_0 : i32, i32, i32
  }
}

module attributes {stable_mosaic.version = 11 : i64} {
  func.func @convt_mm_stats_kernel(%arg0: i32, %arg1: i32, %arg2: memref<1x16x256xbf16, #tpu.memory_space<vmem>>, %arg3: memref<1x256x128xbf16, #tpu.memory_space<vmem>>, %arg4: memref<1x16x128xbf16, #tpu.memory_space<vmem>>, %arg5: memref<1x1x128xf32, #tpu.memory_space<vmem>>, %arg6: memref<1x1x128xf32, #tpu.memory_space<vmem>>) attributes {dimension_semantics = [#tpu.dimension_semantics<parallel>, #tpu.dimension_semantics<arbitrary>], iteration_bounds = array<i64: 4, 2>, scalar_prefetch = 0 : i64, scratch_operands = 0 : i64, tpu.core_type = #tpu.core_type<tc>, window_params = [{transform_indices = @transform_0, window_bounds = array<i64: 1, 16, 256>}, {transform_indices = @transform_1, window_bounds = array<i64: 1, 256, 128>}, {transform_indices = @transform_2, window_bounds = array<i64: 1, 16, 128>}, {transform_indices = @transform_3, window_bounds = array<i64: 1, 1, 128>}, {transform_indices = @transform_4, window_bounds = array<i64: 1, 1, 128>}]} {
    %c0_i32 = arith.constant 0 : i32
    %0 = arith.cmpi eq, %arg1, %c0_i32 : i32
    %1 = arith.extui %0 : i1 to i32
    %c0_i32_0 = arith.constant 0 : i32
    %2 = arith.cmpi ne, %1, %c0_i32_0 : i32
    scf.if %2 {
      %cst_23 = arith.constant 0.000000e+00 : f32
      %24 = vector.broadcast %cst_23 : f32 to vector<1x1x128xf32>
      %c0_24 = arith.constant 0 : index
      %c0_25 = arith.constant 0 : index
      %c0_26 = arith.constant 0 : index
      %25 = vector.load %arg5[%c0_24, %c0_25, %c0_26] : memref<1x1x128xf32, #tpu.memory_space<vmem>>, vector<1x1x128xf32>
      tpu.vector_store %arg5[%c0_24, %c0_25, %c0_26], %24 {strides = array<i32>} : memref<1x1x128xf32, #tpu.memory_space<vmem>>, vector<1x1x128xf32>,
      %cst_27 = arith.constant 0.000000e+00 : f32
      %26 = vector.broadcast %cst_27 : f32 to vector<1x1x128xf32>
      %c0_28 = arith.constant 0 : index
      %c0_29 = arith.constant 0 : index
      %c0_30 = arith.constant 0 : index
      %27 = vector.load %arg6[%c0_28, %c0_29, %c0_30] : memref<1x1x128xf32, #tpu.memory_space<vmem>>, vector<1x1x128xf32>
      tpu.vector_store %arg6[%c0_28, %c0_29, %c0_30], %26 {strides = array<i32>} : memref<1x1x128xf32, #tpu.memory_space<vmem>>, vector<1x1x128xf32>,
    } else {
    }
    %c0 = arith.constant 0 : index
    %c0_1 = arith.constant 0 : index
    %c0_2 = arith.constant 0 : index
    %3 = vector.load %arg2[%c0, %c0_1, %c0_2] : memref<1x16x256xbf16, #tpu.memory_space<vmem>>, vector<1x16x256xbf16>
    %4 = vector.shape_cast %3 : vector<1x16x256xbf16> to vector<16x256xbf16>
    %c0_3 = arith.constant 0 : index
    %c0_4 = arith.constant 0 : index
    %c0_5 = arith.constant 0 : index
    %5 = vector.load %arg3[%c0_3, %c0_4, %c0_5] : memref<1x256x128xbf16, #tpu.memory_space<vmem>>, vector<1x256x128xbf16>
    %6 = vector.shape_cast %5 : vector<1x256x128xbf16> to vector<256x128xbf16>
    %cst = arith.constant dense<0.000000e+00> : vector<16x128xf32>
    %7 = tpu.matmul %4, %6, %cst {dimension_numbers = #tpu.dot_dimension_numbers<[1], [0], [0], [1], [0, 0, 1, 1], [], []>} : vector<16x256xbf16>, vector<256x128xbf16>, vector<16x128xf32> -> vector<16x128xf32>
    %c0_6 = arith.constant 0 : index
    %c0_7 = arith.constant 0 : index
    %c0_8 = arith.constant 0 : index
    %8 = vector.load %arg5[%c0_6, %c0_7, %c0_8] : memref<1x1x128xf32, #tpu.memory_space<vmem>>, vector<1x1x128xf32>
    %cst_9 = arith.constant dense<0.000000e+00> : vector<128xf32>
    %9 = vector.multi_reduction <add>, %7, %cst_9 [0] : vector<16x128xf32> to vector<128xf32>
    %10 = vector.shape_cast %9 : vector<128xf32> to vector<1x128xf32>
    %11 = vector.shape_cast %10 : vector<1x128xf32> to vector<1x1x128xf32>
    %12 = arith.addf %8, %11 : vector<1x1x128xf32>
    %c0_10 = arith.constant 0 : index
    %c0_11 = arith.constant 0 : index
    %c0_12 = arith.constant 0 : index
    %13 = vector.load %arg5[%c0_10, %c0_11, %c0_12] : memref<1x1x128xf32, #tpu.memory_space<vmem>>, vector<1x1x128xf32>
    tpu.vector_store %arg5[%c0_10, %c0_11, %c0_12], %12 {strides = array<i32>} : memref<1x1x128xf32, #tpu.memory_space<vmem>>, vector<1x1x128xf32>,
    %c0_13 = arith.constant 0 : index
    %c0_14 = arith.constant 0 : index
    %c0_15 = arith.constant 0 : index
    %14 = vector.load %arg6[%c0_13, %c0_14, %c0_15] : memref<1x1x128xf32, #tpu.memory_space<vmem>>, vector<1x1x128xf32>
    %15 = arith.mulf %7, %7 : vector<16x128xf32>
    %cst_16 = arith.constant dense<0.000000e+00> : vector<128xf32>
    %16 = vector.multi_reduction <add>, %15, %cst_16 [0] : vector<16x128xf32> to vector<128xf32>
    %17 = vector.shape_cast %16 : vector<128xf32> to vector<1x128xf32>
    %18 = vector.shape_cast %17 : vector<1x128xf32> to vector<1x1x128xf32>
    %19 = arith.addf %14, %18 : vector<1x1x128xf32>
    %c0_17 = arith.constant 0 : index
    %c0_18 = arith.constant 0 : index
    %c0_19 = arith.constant 0 : index
    %20 = vector.load %arg6[%c0_17, %c0_18, %c0_19] : memref<1x1x128xf32, #tpu.memory_space<vmem>>, vector<1x1x128xf32>
    tpu.vector_store %arg6[%c0_17, %c0_18, %c0_19], %19 {strides = array<i32>} : memref<1x1x128xf32, #tpu.memory_space<vmem>>, vector<1x1x128xf32>,
    %21 = vector.shape_cast %7 : vector<16x128xf32> to vector<1x16x128xf32>
    %22 = arith.truncf %21 : vector<1x16x128xf32> to vector<1x16x128xbf16>
    %c0_20 = arith.constant 0 : index
    %c0_21 = arith.constant 0 : index
    %c0_22 = arith.constant 0 : index
    %23 = vector.load %arg4[%c0_20, %c0_21, %c0_22] : memref<1x16x128xbf16, #tpu.memory_space<vmem>>, vector<1x16x128xbf16>
    tpu.vector_store %arg4[%c0_20, %c0_21, %c0_22], %22 {strides = array<i32>} : memref<1x16x128xbf16, #tpu.memory_space<vmem>>, vector<1x16x128xbf16>,
    return
  }
  func.func @transform_0(%arg0: i32, %arg1: i32) -> (i32, i32, i32) {
    %c0_i32 = arith.constant 0 : i32
    %c0_i32_0 = arith.constant 0 : i32
    return %arg0, %arg1, %c0_i32 : i32, i32, i32
  }
  func.func @transform_1(%arg0: i32, %arg1: i32) -> (i32, i32, i32) {
    %c0_i32 = arith.constant 0 : i32
    %c0_i32_0 = arith.constant 0 : i32
    %c0_i32_1 = arith.constant 0 : i32
    return %arg0, %c0_i32, %c0_i32_0 : i32, i32, i32
  }
  func.func @transform_2(%arg0: i32, %arg1: i32) -> (i32, i32, i32) {
    %c0_i32 = arith.constant 0 : i32
    %c0_i32_0 = arith.constant 0 : i32
    return %arg0, %arg1, %c0_i32 : i32, i32, i32
  }
  func.func @transform_3(%arg0: i32, %arg1: i32) -> (i32, i32, i32) {
    %c0_i32 = arith.constant 0 : i32
    %c0_i32_0 = arith.constant 0 : i32
    %c0_i32_1 = arith.constant 0 : i32
    return %arg0, %c0_i32, %c0_i32_0 : i32, i32, i32
  }
  func.func @transform_4(%arg0: i32, %arg1: i32) -> (i32, i32, i32) {
    %c0_i32 = arith.constant 0 : i32
    %c0_i32_0 = arith.constant 0 : i32
    %c0_i32_1 = arith.constant 0 : i32
    return %arg0, %c0_i32, %c0_i32_0 : i32, i32, i32
  }
}

module attributes {stable_mosaic.version = 11 : i64} {
  func.func @convt_mm_kernel(%arg0: i32, %arg1: i32, %arg2: memref<1x64x128xbf16, #tpu.memory_space<vmem>>, %arg3: memref<1x128x128xbf16, #tpu.memory_space<vmem>>, %arg4: memref<1x128xf32, #tpu.memory_space<vmem>>, %arg5: memref<1x64x128xf32, #tpu.memory_space<vmem>>) attributes {dimension_semantics = [#tpu.dimension_semantics<parallel>, #tpu.dimension_semantics<parallel>], iteration_bounds = array<i64: 4, 2>, scalar_prefetch = 0 : i64, scratch_operands = 0 : i64, tpu.core_type = #tpu.core_type<tc>, window_params = [{transform_indices = @transform_0, window_bounds = array<i64: 1, 64, 128>}, {transform_indices = @transform_1, window_bounds = array<i64: 1, 128, 128>}, {pipeline_mode = #tpu.pipeline_mode<synchronous>, transform_indices = @transform_2, window_bounds = array<i64: 1, 128>}, {transform_indices = @transform_3, window_bounds = array<i64: 1, 64, 128>}]} {
    %c0 = arith.constant 0 : index
    %c0_0 = arith.constant 0 : index
    %c0_1 = arith.constant 0 : index
    %0 = vector.load %arg2[%c0, %c0_0, %c0_1] : memref<1x64x128xbf16, #tpu.memory_space<vmem>>, vector<1x64x128xbf16>
    %1 = vector.shape_cast %0 : vector<1x64x128xbf16> to vector<64x128xbf16>
    %c0_2 = arith.constant 0 : index
    %c0_3 = arith.constant 0 : index
    %c0_4 = arith.constant 0 : index
    %2 = vector.load %arg3[%c0_2, %c0_3, %c0_4] : memref<1x128x128xbf16, #tpu.memory_space<vmem>>, vector<1x128x128xbf16>
    %3 = vector.shape_cast %2 : vector<1x128x128xbf16> to vector<128x128xbf16>
    %cst = arith.constant dense<0.000000e+00> : vector<64x128xf32>
    %4 = tpu.matmul %1, %3, %cst {dimension_numbers = #tpu.dot_dimension_numbers<[1], [0], [0], [1], [0, 0, 1, 1], [], []>} : vector<64x128xbf16>, vector<128x128xbf16>, vector<64x128xf32> -> vector<64x128xf32>
    %c0_5 = arith.constant 0 : index
    %c0_6 = arith.constant 0 : index
    %5 = vector.load %arg4[%c0_5, %c0_6] : memref<1x128xf32, #tpu.memory_space<vmem>>, vector<1x128xf32>
    %6 = vector.broadcast %5 : vector<1x128xf32> to vector<64x128xf32>
    %7 = arith.addf %4, %6 : vector<64x128xf32>
    %8 = math.tanh %7 : vector<64x128xf32>
    %9 = vector.shape_cast %8 : vector<64x128xf32> to vector<1x64x128xf32>
    %c0_7 = arith.constant 0 : index
    %c0_8 = arith.constant 0 : index
    %c0_9 = arith.constant 0 : index
    %10 = vector.load %arg5[%c0_7, %c0_8, %c0_9] : memref<1x64x128xf32, #tpu.memory_space<vmem>>, vector<1x64x128xf32>
    tpu.vector_store %arg5[%c0_7, %c0_8, %c0_9], %9 {strides = array<i32>} : memref<1x64x128xf32, #tpu.memory_space<vmem>>, vector<1x64x128xf32>,
    return
  }
  func.func @transform_0(%arg0: i32, %arg1: i32) -> (i32, i32, i32) {
    %c0_i32 = arith.constant 0 : i32
    %c0_i32_0 = arith.constant 0 : i32
    return %arg0, %arg1, %c0_i32 : i32, i32, i32
  }
  func.func @transform_1(%arg0: i32, %arg1: i32) -> (i32, i32, i32) {
    %c0_i32 = arith.constant 0 : i32
    %c0_i32_0 = arith.constant 0 : i32
    %c0_i32_1 = arith.constant 0 : i32
    return %arg0, %c0_i32, %c0_i32_0 : i32, i32, i32
  }
  func.func @transform_2(%arg0: i32, %arg1: i32) -> (i32, i32) {
    %c0_i32 = arith.constant 0 : i32
    %c0_i32_0 = arith.constant 0 : i32
    %c0_i32_1 = arith.constant 0 : i32
    return %c0_i32, %c0_i32_0 : i32, i32
  }
  func.func @transform_3(%arg0: i32, %arg1: i32) -> (i32, i32, i32) {
    %c0_i32 = arith.constant 0 : i32
    %c0_i32_0 = arith.constant 0 : i32
    return %arg0, %arg1, %c0_i32 : i32, i32, i32
  }
}

</mosaic_0001>

<bundles_post_ra>
// kernel: _lambda_.6
= control target key start
LH: loop header
LB: loop body
LE: loop exit
PB: predicated region body
PF: predicated region fallthrough
CT: control target
= control target key end

     0   :  { %s562_s9 = smov 0   ;;  %s616_s0 = inlined_call_operand.vmem [shape: bf16[128,128], index: 0, kind: input, shape index: {}]   ;;  %s617_s1 = inlined_call_operand.vmem [shape: bf16[128,128], index: 1, kind: input, shape index: {}]   ;;  %s618_s2 = inlined_call_operand.vmem [shape: bf16[128,128], index: 2, kind: output, shape index: {}]  }
   0x1 LB: > { %s405_s10 = sadd.s32 4294967295, %s545_s9   ;;  %p409_p0 = scmp.ge.s32.totalorder %s545_s9, 1  ;;  %s545_s9 = sphi %s562_s9, %s12_s9  }
   0x2   : > { %p113_p1 = scmp.lt.s32.totalorder %s545_s9, 3 }
   0x4   : > { %p114_p2 = pnand %p409_p0, %p113_p1 }
   0x5   : > { %s410_s13 = sshll.u32 (!%p114_p2), %s405_s10, 3 }
   0x6   : > { %117 = sbr.rel (%p114_p2) target bundleno = 246 (0xf6), region = 28  ;;  %p136_p3 = scmp.lt.s32.totalorder (!%p114_p2), %s410_s13, 15 }
   0xb   : > { %v527_v0 = vld [vmem:[%s617_s1 + $0x38] sm:$0xff]   ;;  %v528_v1 = vld [vmem:[%s617_s1 + $0x30] sm:$0xff]   ;;  %s620_s13 = smov (!%p136_p3, %s410_s13), 15  ;;  %v529_v2 = vld [vmem:[%s617_s1 + $0x28] sm:$0xff]  }
   0xc   : > { %479 = vmatprep.subr.bf16.mxu0 %v527_v0  ;;  %503 = vmatprep.subr.bf16.mxu1 %v527_v0  ;;  %s411_s18 = sshll.u32 %s620_s13, 2  ;;  %v530_v3 = vld [vmem:[%s617_s1 + $0x20] sm:$0xff]   ;;  %v531_v6 = vld [vmem:[%s617_s1 + $0x18] sm:$0xff]   ;;  %v532_v7 = vld [vmem:[%s617_s1 + $0x10] sm:$0xff]  }
   0xd   : > { %480 = vmatpush3.bf16.msra.mxu0 %v527_v0  ;;  %511 = vmatpush3.bf16.msra.mxu1 %v527_v0  ;;  %s587_s21 = scalar_lea.vmem %s616_s0, %s411_s18  ;;  %v533_v8 = vld [vmem:[%s617_s1 + $0x8] sm:$0xff]   ;;  %v534_v9 = vld [vmem:[%s617_s1] sm:$0xff]   ;;  %s145_s6 = scalar_lea.vmem %s618_s2, %s411_s18 }
   0xe   : > { %481 = vmatprep.subr.bf16.mxu0 %v528_v1  ;;  %504 = vmatprep.subr.bf16.mxu1 %v528_v1  ;;  %v535_v4 = vld [vmem:[%s587_s21] sm:$0xff]   ;;  %v536_v5 = vld [vmem:[%s587_s21 + $0x10] sm:$0xff]   ;;  %v537_v10 = vld [vmem:[%s587_s21 + $0x8] sm:$0xff]  }
   0xf   : > { %495 = vmatprep.mubr.bf16.mxu0 %v535_v4  ;;  %499 = vmatprep.mubr.bf16.mxu1 %v536_v5  ;;  %v538_v11 = vld [vmem:[%s587_s21 + $0x18] sm:$0xff]  }
  0x11   : > { %482 = vmatpush3.bf16.msra.mxu0 %v528_v1  ;;  %512 = vmatpush3.bf16.msra.mxu1 %v528_v1 }
  0x12   : > { %483 = vmatprep.subr.bf16.mxu0 %v529_v2  ;;  %505 = vmatprep.subr.bf16.mxu1 %v529_v2 }
  0x15   : > { %484 = vmatpush3.bf16.msra.mxu0 %v529_v2  ;;  %513 = vmatpush3.bf16.msra.mxu1 %v529_v2 }
  0x16   : > { %485 = vmatprep.subr.bf16.mxu0 %v530_v3  ;;  %506 = vmatprep.subr.bf16.mxu1 %v530_v3 }
  0x19   : > { %486 = vmatpush3.bf16.msra.mxu0 %v530_v3  ;;  %514 = vmatpush3.bf16.msra.mxu1 %v530_v3 }
  0x1a   : > { %487 = vmatprep.subr.bf16.mxu0 %v531_v6  ;;  %507 = vmatprep.subr.bf16.mxu1 %v531_v6 }
  0x1d   : > { %488 = vmatpush3.bf16.msra.mxu0 %v531_v6  ;;  %515 = vmatpush3.bf16.msra.mxu1 %v531_v6 }
  0x1e   : > { %489 = vmatprep.subr.bf16.mxu0 %v532_v7  ;;  %508 = vmatprep.subr.bf16.mxu1 %v532_v7 }
  0x21   : > { %490 = vmatpush3.bf16.msra.mxu0 %v532_v7  ;;  %516 = vmatpush3.bf16.msra.mxu1 %v532_v7 }
  0x22   : > { %491 = vmatprep.subr.bf16.mxu0 %v533_v8  ;;  %509 = vmatprep.subr.bf16.mxu1 %v533_v8 }
  0x25   : > { %492 = vmatpush3.bf16.msra.mxu0 %v533_v8  ;;  %517 = vmatpush3.bf16.msra.mxu1 %v533_v8 }
  0x26   : > { %493 = vmatprep.subr.bf16.mxu0 %v534_v9  ;;  %510 = vmatprep.subr.bf16.mxu1 %v534_v9 }
  0x29   : > { %494 = vmatpush3.bf16.msra.mxu0 %v534_v9  ;;  %518 = vmatpush3.bf16.msra.mxu1 %v534_v9 }
  0x2c   : > { %496 = vmatmul.mubr.bf16.vlgmr.msra.gmra.mxu0 %v537_v10  ;;  %500 = vmatmul.mubr.bf16.vlgmr.msra.gmra.mxu1 %v538_v11 }
  0xec   : > { %v497_v12 = vpop.f32.mrf.mxu0  ;;  %v501_v13 = vpop.f32.mrf.mxu1 }
  0xee   : > { %v278_v14 = vpop.f32.mrf.mxu0  ;;  %v294_v15 = vpop.f32.mrf.mxu1 }
  0xf0   : > { %v498_v16 = vpop.f32.mrf.mxu0  ;;  %v502_v17 = vpop.f32.mrf.mxu1 }
  0xf1   : > { %v452_v18 = vpack.c.bf16 %v498_v16, %v497_v12  ;;  %v462_v19 = vpack.c.bf16 %v502_v17, %v501_v13 }
  0xf2   : > { %v281_v20 = vpop.f32.mrf.mxu0  ;;  %v297_v21 = vpop.f32.mrf.mxu1 }
  0xf3   : > { %464 = vst [vmem:[%s145_s6 + $0x8] sm:$0xff] %v452_v18   ;;  %466 = vst [vmem:[%s145_s6 + $0x18] sm:$0xff] %v462_v19   ;;  %v447_v22 = vpack.c.bf16 %v281_v20, %v278_v14  ;;  %v457_v23 = vpack.c.bf16 %v297_v21, %v294_v15 }
  0xf5   : > { %448 = vst [vmem:[%s145_s6] sm:$0xff] %v447_v22   ;;  %465 = vst [vmem:[%s145_s6 + $0x10] sm:$0xff] %v457_v23  }
  0xf6 PF: > { %s12_s9 = sadd.s32 1, %s545_s9  }
  0xf7   : > { %p9_p4 = scmp.ge.s32.totalorder %s12_s9, 4  }
  0xf9   :  { %11 = sbr.rel (!%p9_p4) target bundleno = 1 (0x1), region = 58 }

// kernel: _lambda_.7
= control target key start
LH: loop header
LB: loop body
LE: loop exit
PB: predicated region body
PF: predicated region fallthrough
CT: control target
= control target key end

     0   :  { %s739_s15 = smov 0   ;;  %s741_s16 = smov 0   ;;  %s845_s0 = inlined_call_operand.vmem [shape: bf16[32,256], index: 0, kind: input, shape index: {}]   ;;  %s846_s1 = inlined_call_operand.vmem [shape: bf16[256,128], index: 1, kind: input, shape index: {}]   ;;  %s847_s2 = inlined_call_operand.vmem [shape: bf16[32,128], index: 2, kind: output, shape index: {0}]   ;;  %s848_s3 = inlined_call_operand.vmem [shape: f32[2,1,128], index: 3, kind: output, shape index: {1}]   ;;  %s849_s4 = inlined_call_operand.vmem [shape: f32[2,1,128], index: 4, kind: output, shape index: {2}]  }
   0x1   :  { %s743_s17 = smov 0  }
   0x2 LB: > { %s27_s18 = sadd.s32 1, %s707_s16  ;;  %p587_p0 = scmp.ge.s32.totalorder %s711_s17, 1  ;;  %s711_s17 = sphi %s743_s17, %s15_s17   ;;  %s707_s16 = sphi %s741_s16, %s851_s16   ;;  %s703_s15 = sphi %s739_s15, %s850_s15  }
   0x3   : > { %p29_p1 = scmp.ge.s32.totalorder %s27_s18, 2  ;;  %p187_p2 = scmp.lt.s32.totalorder %s711_s17, 3 }
   0x5   : > { %s853_s18 = smov (%p29_p1, %s27_s18), 0  ;;  %p188_p3 = pnand %p587_p0, %p187_p2 }
   0x6   : > { %s588_s21 = sshll.u32 (!%p188_p3), %s703_s15, 1  ;;  %p239_p5 = scmp.lt.s32.totalorder (!%p188_p3), %s703_s15, 1 }
   0x7   : > { %191 = sbr.rel (%p188_p3) target bundleno = 265 (0x109), region = 28  ;;  %p224_p4 = scmp.lt.s32.totalorder (!%p188_p3), %s588_s21, 3 }
   0xc   : > { %v670_v0 = vld [vmem:[%s846_s1 + $0x78] sm:$0xff]   ;;  %v672_v2 = vld [vmem:[%s846_s1 + $0x70] sm:$0xff]   ;;  %v674_v4 = vld [vmem:[%s846_s1 + $0x68] sm:$0xff]   ;;  %s855_s21 = smov (!%p224_p4, %s588_s21), 3  ;;  %s857_s15 = smov (!%p239_p5, %s703_s15), 1  ;;  %v713_v18 = vmov 0.0  }
   0xd   : > { %v671_v1 = vld [vmem:[%s846_s1 + $0x38] sm:$0xff]   ;;  %623 = vmatprep.subr.bf16.mxu0 %v670_v0  ;;  %v673_v3 = vld [vmem:[%s846_s1 + $0x30] sm:$0xff]   ;;  %v675_v5 = vld [vmem:[%s846_s1 + $0x28] sm:$0xff]   ;;  %s615_s10 = sshll.u32 %s855_s21, 3  ;;  %s819_s11 = scalar_lea.vmem %s848_s3, %s857_s15 }
   0xe   : > { %624 = vmatpush3.bf16.msra.mxu0 %v671_v1  ;;  %v676_v6 = vld [vmem:[%s846_s1 + $0x60] sm:$0xff]   ;;  %v678_v8 = vld [vmem:[%s846_s1 + $0x58] sm:$0xff]   ;;  %s228_s19 = scalar_lea.vmem %s845_s0, %s615_s10  ;;  %v680_v10 = vld [vmem:[%s846_s1 + $0x50] sm:$0xff]   ;;  %s824_s14 = scalar_lea.vmem %s849_s4, %s857_s15  ;;  %250 = vst [vmem:[%s819_s11] sm:$0x1] %v713_v18 }
   0xf   : > { %625 = vmatprep.subr.bf16.mxu0 %v672_v2  ;;  %v677_v7 = vld [vmem:[%s846_s1 + $0x20] sm:$0xff]   ;;  %v679_v9 = vld [vmem:[%s846_s1 + $0x18] sm:$0xff]   ;;  %v681_v12 = vld [vmem:[%s846_s1 + $0x10] sm:$0xff]   ;;  %251 = vst [vmem:[%s824_s14] sm:$0x1] %v713_v18 }
  0x10   : > { %v688_v11 = vld [vmem:[%s228_s19 + $0x4] ss:$8 sps:$4 sm:$0xff]   ;;  %v686_v17 = vld [vmem:[%s228_s19] ss:$8 sps:$4 sm:$0xff]   ;;  %s592_s19 = sshll.u32 %s855_s21, 2 }
  0x11   : > { %424 = vmatprep.mubr.bf16.mxu0 %v688_v11  ;;  %v682_v13 = vld [vmem:[%s846_s1 + $0x48] sm:$0xff]   ;;  %v684_v15 = vld [vmem:[%s846_s1 + $0x40] sm:$0xff]   ;;  %s236_s23 = scalar_lea.vmem %s847_s2, %s592_s19 }
  0x12   : > { %626 = vmatpush3.bf16.msra.mxu0 %v673_v3  ;;  %v683_v14 = vld [vmem:[%s846_s1 + $0x8] sm:$0xff]   ;;  %v685_v16 = vld [vmem:[%s846_s1] sm:$0xff]  }
  0x13   : > { %627 = vmatprep.subr.bf16.mxu0 %v674_v4 }
  0x15   : > { %v433_v39 = vld [vmem:[%s819_s11] sm:$0x1] }
  0x16   : > { %628 = vmatpush3.bf16.msra.mxu0 %v675_v5  ;;  %v443_v42 = vld [vmem:[%s824_s14] sm:$0x1] }
  0x17   : > { %629 = vmatprep.subr.bf16.mxu0 %v676_v6 }
  0x1a   : > { %630 = vmatpush3.bf16.msra.mxu0 %v677_v7 }
  0x1b   : > { %631 = vmatprep.subr.bf16.mxu0 %v678_v8 }
  0x1e   : > { %632 = vmatpush3.bf16.msra.mxu0 %v679_v9 }
  0x1f   : > { %633 = vmatprep.subr.bf16.mxu0 %v680_v10 }
  0x22   : > { %634 = vmatpush3.bf16.msra.mxu0 %v681_v12 }
  0x23   : > { %635 = vmatprep.subr.bf16.mxu0 %v682_v13 }
  0x26   : > { %636 = vmatpush3.bf16.msra.mxu0 %v683_v14 }
  0x27   : > { %637 = vmatprep.subr.bf16.mxu0 %v684_v15 }
  0x2a   : > { %638 = vmatpush3.bf16.msra.mxu0 %v685_v16 }
  0x2d   : > { %425 = vmatmul.mubr.bf16.vlgmr.msra.gmra.mxu0 %v686_v17 }
  0xed   : > { %v639_v19 = vpop.f32.mrf.mxu0 }
  0xef   : > { %v640_v20 = vpop.f32.mrf.mxu0 }
  0xf0   : > { %v641_v22 = vadd.f32 %v640_v20, %v639_v19 }
  0xf1   : > { %v642_v21 = vpop.f32.mrf.mxu0 }
  0xf2   : > { %v444_v25 = vmul.f32 %v641_v22, %v641_v22 }
  0xf3   : > { %v643_v23 = vpop.f32.mrf.mxu0 }
  0xf4   : > { %v644_v24 = vadd.f32 %v643_v23, %v642_v21 }
  0xf6   : > { %v434_v26 = vadd.f32 %v644_v24, %v641_v22  ;;  %v445_v27 = vmul.f32 %v644_v24, %v644_v24  ;;  %v621_v28 = vpack.c.bf16 %v644_v24, %v641_v22 }
  0xf8   : > { %v435_v29 = vrot.slane %v434_v26, 4  ;;  %v446_v30 = vadd.f32 %v445_v27, %v444_v25  ;;  %622 = vst [vmem:[%s236_s23] sm:$0xff] %v621_v28  }
  0xfa   : > { %v436_v31 = vadd.f32 %v435_v29, %v434_v26  ;;  %v447_v32 = vrot.slane %v446_v30, 4 }
  0xfc   : > { %v437_v33 = vrot.slane %v436_v31, 2  ;;  %v448_v34 = vadd.f32 %v447_v32, %v446_v30 }
  0xfe   : > { %v438_v35 = vadd.f32 %v437_v33, %v436_v31  ;;  %v449_v36 = vrot.slane %v448_v34, 2 }
 0x100   : > { %v439_v37 = vrot.slane %v438_v35, 1  ;;  %v450_v38 = vadd.f32 %v449_v36, %v448_v34 }
 0x102   : > { %v440_v40 = vadd.f32 %v439_v37, %v438_v35  ;;  %v451_v41 = vrot.slane %v450_v38, 1 }
 0x104   : > { %v441_v43 = vadd.f32 %v440_v40, %v433_v39  ;;  %v452_v44 = vadd.f32 %v451_v41, %v450_v38 }
 0x106   : > { %442 = vst [vmem:[%s819_s11] sm:$0x1] %v441_v43  ;;  %v453_v45 = vadd.f32 %v452_v44, %v443_v42 }
 0x108   : > { %454 = vst [vmem:[%s824_s14] sm:$0x1] %v453_v45 }
 0x109 PF: > { %s15_s17 = sadd.s32 1, %s711_s17   ;;  %s850_s15 = smov %s707_s16 }
 0x10a   : > { %p12_p6 = scmp.ge.s32.totalorder %s15_s17, 4   ;;  %s851_s16 = smov %s853_s18 }
 0x10c   :  { %14 = sbr.rel (!%p12_p6) target bundleno = 2 (0x2), region = 86 }

// kernel: _lambda_.8
= control target key start
LH: loop header
LB: loop body
LE: loop exit
PB: predicated region body
PF: predicated region fallthrough
CT: control target
= control target key end

     0   :  { %s641_s1 = inlined_call_operand.vmem [shape: bf16[512,128], index: 1, kind: input, shape index: {}]   ;;  %s642_s0 = inlined_call_operand.vmem [shape: bf16[16,512], index: 0, kind: input, shape index: {}]   ;;  %s643_s2 = inlined_call_operand.vmem [shape: bf16[16,128], index: 2, kind: output, shape index: {}]  }
   0x1   :  { %v477_v0 = vld [vmem:[%s641_s1 + $0x78] sm:$0xff]   ;;  %v481_v4 = vld [vmem:[%s641_s1 + $0x70] sm:$0xff]   ;;  %v485_v8 = vld [vmem:[%s641_s1 + $0x68] sm:$0xff]  }
   0x2   :  { %v478_v1 = vld [vmem:[%s641_s1 + $0xf8] sm:$0xff]   ;;  %433 = vmatprep.subr.bf16.mxu0 %v477_v0  ;;  %v482_v5 = vld [vmem:[%s641_s1 + $0xf0] sm:$0xff]   ;;  %v486_v9 = vld [vmem:[%s641_s1 + $0xe8] sm:$0xff]  }
   0x3   :  { %v479_v2 = vld [vmem:[%s641_s1 + $0x38] sm:$0xff]   ;;  %455 = vmatprep.subr.bf16.mxu1 %v478_v1  ;;  %v483_v6 = vld [vmem:[%s641_s1 + $0x30] sm:$0xff]   ;;  %v487_v10 = vld [vmem:[%s641_s1 + $0x28] sm:$0xff]  }
   0x4   :  { %v480_v3 = vld [vmem:[%s641_s1 + $0xb8] sm:$0xff]   ;;  %434 = vmatpush3.bf16.msra.mxu0 %v479_v2  ;;  %v484_v7 = vld [vmem:[%s641_s1 + $0xb0] sm:$0xff]   ;;  %v488_v11 = vld [vmem:[%s641_s1 + $0xa8] sm:$0xff]  }
   0x5   :  { %456 = vmatpush3.bf16.msra.mxu1 %v480_v3  ;;  %435 = vmatprep.subr.bf16.mxu0 %v481_v4  ;;  %v489_v12 = vld [vmem:[%s641_s1 + $0x60] sm:$0xff]   ;;  %v493_v16 = vld [vmem:[%s641_s1 + $0x58] sm:$0xff]   ;;  %v497_v20 = vld [vmem:[%s641_s1 + $0x50] sm:$0xff]  }
   0x6   :  { %457 = vmatprep.subr.bf16.mxu1 %v482_v5  ;;  %v490_v13 = vld [vmem:[%s641_s1 + $0xe0] sm:$0xff]   ;;  %v494_v17 = vld [vmem:[%s641_s1 + $0xd8] sm:$0xff]   ;;  %v498_v21 = vld [vmem:[%s641_s1 + $0xd0] sm:$0xff]  }
   0x7   :  { %v491_v14 = vld [vmem:[%s641_s1 + $0x20] sm:$0xff]   ;;  %v495_v18 = vld [vmem:[%s641_s1 + $0x18] sm:$0xff]   ;;  %v499_v22 = vld [vmem:[%s641_s1 + $0x10] sm:$0xff]  }
   0x8   :  { %436 = vmatpush3.bf16.msra.mxu0 %v483_v6  ;;  %v492_v15 = vld [vmem:[%s641_s1 + $0xa0] sm:$0xff]   ;;  %v496_v19 = vld [vmem:[%s641_s1 + $0x98] sm:$0xff]   ;;  %v500_v23 = vld [vmem:[%s641_s1 + $0x90] sm:$0xff]  }
   0x9   :  { %458 = vmatpush3.bf16.msra.mxu1 %v484_v7  ;;  %437 = vmatprep.subr.bf16.mxu0 %v485_v8  ;;  %v501_v24 = vld [vmem:[%s641_s1 + $0x48] sm:$0xff]   ;;  %v505_v28 = vld [vmem:[%s641_s1 + $0x40] sm:$0xff]  }
   0xa   :  { %459 = vmatprep.subr.bf16.mxu1 %v486_v9  ;;  %v502_v25 = vld [vmem:[%s641_s1 + $0xc8] sm:$0xff]   ;;  %v506_v29 = vld [vmem:[%s641_s1 + $0xc0] sm:$0xff]  }
   0xb   :  { %v503_v26 = vld [vmem:[%s641_s1 + $0x8] sm:$0xff]   ;;  %v507_v30 = vld [vmem:[%s641_s1] sm:$0xff]  }
   0xc   :  { %438 = vmatpush3.bf16.msra.mxu0 %v487_v10  ;;  %v504_v27 = vld [vmem:[%s641_s1 + $0x88] sm:$0xff]   ;;  %v508_v31 = vld [vmem:[%s641_s1 + $0x80] sm:$0xff]  }
   0xd   :  { %460 = vmatpush3.bf16.msra.mxu1 %v488_v11  ;;  %439 = vmatprep.subr.bf16.mxu0 %v489_v12  ;;  %v509_v32 = vld [vmem:[%s642_s0] ss:$16 sps:$4 sm:$0xff]   ;;  %v511_v33 = vld [vmem:[%s642_s0 + $0x4] ss:$16 sps:$4 sm:$0xff]   ;;  %v512_v34 = vld [vmem:[%s642_s0 + $0x8] ss:$16 sps:$4 sm:$0xff]  }
   0xe   :  { %461 = vmatprep.subr.bf16.mxu1 %v490_v13  ;;  %v514_v35 = vld [vmem:[%s642_s0 + $0xc] ss:$16 sps:$4 sm:$0xff]   ;;  %324 = vmatprep.mubr.bf16.mxu0 %v511_v33 }
   0xf   :  { %365 = vmatprep.mubr.bf16.mxu1 %v514_v35 }
  0x10   :  { %440 = vmatpush3.bf16.msra.mxu0 %v491_v14 }
  0x11   :  { %462 = vmatpush3.bf16.msra.mxu1 %v492_v15  ;;  %441 = vmatprep.subr.bf16.mxu0 %v493_v16 }
  0x12   :  { %463 = vmatprep.subr.bf16.mxu1 %v494_v17 }
  0x14   :  { %442 = vmatpush3.bf16.msra.mxu0 %v495_v18 }
  0x15   :  { %464 = vmatpush3.bf16.msra.mxu1 %v496_v19  ;;  %443 = vmatprep.subr.bf16.mxu0 %v497_v20 }
  0x16   :  { %465 = vmatprep.subr.bf16.mxu1 %v498_v21 }
  0x18   :  { %444 = vmatpush3.bf16.msra.mxu0 %v499_v22 }
  0x19   :  { %466 = vmatpush3.bf16.msra.mxu1 %v500_v23  ;;  %445 = vmatprep.subr.bf16.mxu0 %v501_v24 }
  0x1a   :  { %467 = vmatprep.subr.bf16.mxu1 %v502_v25 }
  0x1c   :  { %446 = vmatpush3.bf16.msra.mxu0 %v503_v26 }
  0x1d   :  { %468 = vmatpush3.bf16.msra.mxu1 %v504_v27  ;;  %447 = vmatprep.subr.bf16.mxu0 %v505_v28 }
  0x1e   :  { %469 = vmatprep.subr.bf16.mxu1 %v506_v29 }
  0x20   :  { %448 = vmatpush3.bf16.msra.mxu0 %v507_v30 }
  0x21   :  { %470 = vmatpush3.bf16.msra.mxu1 %v508_v31 }
  0x23   :  { %325 = vmatmul.mubr.bf16.vlgmr.msra.gmra.mxu0 %v509_v32 }
  0x24   :  { %366 = vmatmul.mubr.bf16.vlgmr.msra.gmra.mxu1 %v512_v34 }
  0xe3   :  { %v449_v36 = vpop.f32.mrf.mxu0 }
  0xe4   :  { %v471_v37 = vpop.f32.mrf.mxu1 }
  0xe5   :  { %v450_v38 = vpop.f32.mrf.mxu0 }
  0xe6   :  { %v472_v39 = vpop.f32.mrf.mxu1  ;;  %v451_v42 = vadd.f32 %v450_v38, %v449_v36 }
  0xe7   :  { %v452_v40 = vpop.f32.mrf.mxu0  ;;  %v473_v43 = vadd.f32 %v472_v39, %v471_v37 }
  0xe8   :  { %v474_v41 = vpop.f32.mrf.mxu1 }
  0xe9   :  { %v453_v44 = vpop.f32.mrf.mxu0  ;;  %v368_v48 = vadd.f32 %v473_v43, %v451_v42 }
  0xea   :  { %v454_v45 = vadd.f32 %v453_v44, %v452_v40  ;;  %v475_v46 = vpop.f32.mrf.mxu1 }
  0xeb   :  { %v476_v47 = vadd.f32 %v475_v46, %v474_v41 }
  0xed   :  { %v371_v49 = vadd.f32 %v476_v47, %v454_v45 }
  0xef   :  { %v431_v50 = vpack.c.bf16 %v371_v49, %v368_v48 }
  0xf1   :  { %432 = vst [vmem:[%s643_s2] sm:$0xff] %v431_v50  }

// kernel: _lambda_.9
= control target key start
LH: loop header
LB: loop body
LE: loop exit
PB: predicated region body
PF: predicated region fallthrough
CT: control target
= control target key end

     0   :  { %s808_s15 = smov 0   ;;  %s810_s16 = smov 0   ;;  %s885_s0 = inlined_call_operand.vmem [shape: bf16[4,16,256], index: 0, kind: input, shape index: {}]   ;;  %s886_s1 = inlined_call_operand.vmem [shape: bf16[4,256,128], index: 1, kind: input, shape index: {}]   ;;  %s887_s2 = inlined_call_operand.vmem [shape: bf16[4,16,128], index: 2, kind: output, shape index: {0}]   ;;  %s888_s3 = inlined_call_operand.vmem [shape: f32[4,1,128], index: 3, kind: output, shape index: {1}]   ;;  %s889_s4 = inlined_call_operand.vmem [shape: f32[4,1,128], index: 4, kind: output, shape index: {2}]  }
   0x1   :  { %s812_s17 = smov 0  }
   0x2 LB: > { %s27_s18 = sadd.s32 1, %s776_s16  ;;  %p653_p0 = scmp.ge.s32.totalorder %s780_s17, 1  ;;  %s780_s17 = sphi %s812_s17, %s15_s17   ;;  %s776_s16 = sphi %s810_s16, %s891_s16   ;;  %s772_s15 = sphi %s808_s15, %s890_s15  }
   0x3   : > { %p29_p1 = scmp.ge.s32.totalorder %s27_s18, 4  ;;  %p199_p2 = scmp.lt.s32.totalorder %s780_s17, 5 }
   0x5   : > { %s893_s18 = smov (%p29_p1, %s27_s18), 0  ;;  %p200_p3 = pnand %p653_p0, %p199_p2 }
   0x6   : > { %p246_p4 = scmp.lt.s32.totalorder (!%p200_p3), %s772_s15, 3 }
   0x7   : > { %203 = sbr.rel (%p200_p3) target bundleno = 268 (0x10c), region = 28 }
   0xc   : > { %s895_s15 = smov (!%p246_p4, %s772_s15), 3  ;;  %v782_v18 = vmov 0.0  }
   0xd   : > { %s683_s19 = sshll.u32 %s895_s15, 7  ;;  %s682_s23 = sshll.u32 %s895_s15, 4 }
   0xe   : > { %s832_s22 = scalar_lea.vmem %s886_s1, %s683_s19  ;;  %s254_s26 = scalar_lea.vmem %s885_s0, %s682_s23 }
   0xf   : > { %v739_v0 = vld [vmem:[%s832_s22 + $0x78] sm:$0xff]   ;;  %v741_v2 = vld [vmem:[%s832_s22 + $0x70] sm:$0xff]   ;;  %v743_v4 = vld [vmem:[%s832_s22 + $0x68] sm:$0xff]   ;;  %s858_s29 = scalar_lea.vmem %s888_s3, %s895_s15  ;;  %s864_s6 = scalar_lea.vmem %s889_s4, %s895_s15 }
  0x10   : > { %v740_v1 = vld [vmem:[%s832_s22 + $0x38] sm:$0xff]   ;;  %692 = vmatprep.subr.bf16.mxu0 %v739_v0  ;;  %v742_v3 = vld [vmem:[%s832_s22 + $0x30] sm:$0xff]   ;;  %v744_v5 = vld [vmem:[%s832_s22 + $0x28] sm:$0xff]   ;;  %282 = vst [vmem:[%s858_s29] sm:$0x1] %v782_v18  ;;  %s684_s7 = sshll.u32 %s895_s15, 3 }
  0x11   : > { %693 = vmatpush3.bf16.msra.mxu0 %v740_v1  ;;  %v745_v6 = vld [vmem:[%s832_s22 + $0x60] sm:$0xff]   ;;  %v747_v8 = vld [vmem:[%s832_s22 + $0x58] sm:$0xff]   ;;  %v749_v10 = vld [vmem:[%s832_s22 + $0x50] sm:$0xff]   ;;  %283 = vst [vmem:[%s864_s6] sm:$0x1] %v782_v18  ;;  %s269_s10 = scalar_lea.vmem %s887_s2, %s684_s7 }
  0x12   : > { %694 = vmatprep.subr.bf16.mxu0 %v741_v2  ;;  %v746_v7 = vld [vmem:[%s832_s22 + $0x20] sm:$0xff]   ;;  %v748_v9 = vld [vmem:[%s832_s22 + $0x18] sm:$0xff]   ;;  %v750_v12 = vld [vmem:[%s832_s22 + $0x10] sm:$0xff]  }
  0x13   : > { %v757_v11 = vld [vmem:[%s254_s26 + $0x4] ss:$8 sps:$4 sm:$0xff]   ;;  %v755_v17 = vld [vmem:[%s254_s26] ss:$8 sps:$4 sm:$0xff]  }
  0x14   : > { %456 = vmatprep.mubr.bf16.mxu0 %v757_v11  ;;  %v751_v13 = vld [vmem:[%s832_s22 + $0x48] sm:$0xff]   ;;  %v753_v15 = vld [vmem:[%s832_s22 + $0x40] sm:$0xff]  }
  0x15   : > { %695 = vmatpush3.bf16.msra.mxu0 %v742_v3  ;;  %v752_v14 = vld [vmem:[%s832_s22 + $0x8] sm:$0xff]   ;;  %v754_v16 = vld [vmem:[%s832_s22] sm:$0xff]  }
  0x16   : > { %696 = vmatprep.subr.bf16.mxu0 %v743_v4 }
  0x17   : > { %v465_v39 = vld [vmem:[%s858_s29] sm:$0x1] }
  0x18   : > { %v475_v42 = vld [vmem:[%s864_s6] sm:$0x1] }
  0x19   : > { %697 = vmatpush3.bf16.msra.mxu0 %v744_v5 }
  0x1a   : > { %698 = vmatprep.subr.bf16.mxu0 %v745_v6 }
  0x1d   : > { %699 = vmatpush3.bf16.msra.mxu0 %v746_v7 }
  0x1e   : > { %700 = vmatprep.subr.bf16.mxu0 %v747_v8 }
  0x21   : > { %701 = vmatpush3.bf16.msra.mxu0 %v748_v9 }
  0x22   : > { %702 = vmatprep.subr.bf16.mxu0 %v749_v10 }
  0x25   : > { %703 = vmatpush3.bf16.msra.mxu0 %v750_v12 }
  0x26   : > { %704 = vmatprep.subr.bf16.mxu0 %v751_v13 }
  0x29   : > { %705 = vmatpush3.bf16.msra.mxu0 %v752_v14 }
  0x2a   : > { %706 = vmatprep.subr.bf16.mxu0 %v753_v15 }
  0x2d   : > { %707 = vmatpush3.bf16.msra.mxu0 %v754_v16 }
  0x30   : > { %457 = vmatmul.mubr.bf16.vlgmr.msra.gmra.mxu0 %v755_v17 }
  0xf0   : > { %v708_v19 = vpop.f32.mrf.mxu0 }
  0xf2   : > { %v709_v20 = vpop.f32.mrf.mxu0 }
  0xf3   : > { %v710_v22 = vadd.f32 %v709_v20, %v708_v19 }
  0xf4   : > { %v711_v21 = vpop.f32.mrf.mxu0 }
  0xf5   : > { %v476_v25 = vmul.f32 %v710_v22, %v710_v22 }
  0xf6   : > { %v712_v23 = vpop.f32.mrf.mxu0 }
  0xf7   : > { %v713_v24 = vadd.f32 %v712_v23, %v711_v21 }
  0xf9   : > { %v466_v26 = vadd.f32 %v713_v24, %v710_v22  ;;  %v477_v27 = vmul.f32 %v713_v24, %v713_v24  ;;  %v690_v28 = vpack.c.bf16 %v713_v24, %v710_v22 }
  0xfb   : > { %v467_v29 = vrot.slane %v466_v26, 4  ;;  %v478_v30 = vadd.f32 %v477_v27, %v476_v25  ;;  %691 = vst [vmem:[%s269_s10] sm:$0xff] %v690_v28  }
  0xfd   : > { %v468_v31 = vadd.f32 %v467_v29, %v466_v26  ;;  %v479_v32 = vrot.slane %v478_v30, 4 }
  0xff   : > { %v469_v33 = vrot.slane %v468_v31, 2  ;;  %v480_v34 = vadd.f32 %v479_v32, %v478_v30 }
 0x101   : > { %v470_v35 = vadd.f32 %v469_v33, %v468_v31  ;;  %v481_v36 = vrot.slane %v480_v34, 2 }
 0x103   : > { %v471_v37 = vrot.slane %v470_v35, 1  ;;  %v482_v38 = vadd.f32 %v481_v36, %v480_v34 }
 0x105   : > { %v472_v40 = vadd.f32 %v471_v37, %v470_v35  ;;  %v483_v41 = vrot.slane %v482_v38, 1 }
 0x107   : > { %v473_v43 = vadd.f32 %v472_v40, %v465_v39  ;;  %v484_v44 = vadd.f32 %v483_v41, %v482_v38 }
 0x109   : > { %474 = vst [vmem:[%s858_s29] sm:$0x1] %v473_v43  ;;  %v485_v45 = vadd.f32 %v484_v44, %v475_v42 }
 0x10b   : > { %486 = vst [vmem:[%s864_s6] sm:$0x1] %v485_v45 }
 0x10c PF: > { %s15_s17 = sadd.s32 1, %s780_s17   ;;  %s890_s15 = smov %s776_s16 }
 0x10d   : > { %p12_p5 = scmp.ge.s32.totalorder %s15_s17, 6   ;;  %s891_s16 = smov %s893_s18 }
 0x10f   :  { %14 = sbr.rel (!%p12_p5) target bundleno = 2 (0x2), region = 89 }

// kernel: _lambda_.10
= control target key start
LH: loop header
LB: loop body
LE: loop exit
PB: predicated region body
PF: predicated region fallthrough
CT: control target
= control target key end

     0   :  { %s845_s15 = smov 0   ;;  %s847_s16 = smov 0   ;;  %s944_s0 = inlined_call_operand.vmem [shape: bf16[4,32,256], index: 0, kind: input, shape index: {}]   ;;  %s945_s1 = inlined_call_operand.vmem [shape: bf16[4,256,128], index: 1, kind: input, shape index: {}]   ;;  %s946_s2 = inlined_call_operand.vmem [shape: bf16[4,32,128], index: 2, kind: output, shape index: {0}]   ;;  %s947_s3 = inlined_call_operand.vmem [shape: f32[4,1,128], index: 3, kind: output, shape index: {1}]   ;;  %s948_s4 = inlined_call_operand.vmem [shape: f32[4,1,128], index: 4, kind: output, shape index: {2}]  }
   0x1   :  { %s849_s17 = smov 0   ;;  %s851_s18 = smov 0  }
   0x2   :  { %s853_s19 = smov 0  }
   0x3 LB: > { %s24_s20 = sadd.s32 1, %s809_s17  ;;  %s27_s21 = sadd.s32 1, %s813_s18  ;;  %s817_s19 = sphi %s853_s19, %s15_s19   ;;  %s813_s18 = sphi %s851_s18, %s954_s18   ;;  %s809_s17 = sphi %s849_s17, %s953_s17   ;;  %s805_s16 = sphi %s847_s16, %s952_s16   ;;  %s801_s15 = sphi %s845_s15, %s951_s15  }
   0x4   : > { %p25_p0 = scmp.ge.s32.totalorder %s24_s20, 2  ;;  %p656_p1 = scmp.ge.s32.totalorder %s817_s19, 1 }
   0x5   : > { %p199_p2 = scmp.lt.s32.totalorder %s817_s19, 9 }
   0x6   : > { %s956_s20 = smov (%p25_p0, %s24_s20), 0  ;;  %s958_s21 = smov (!%p25_p0, %s27_s21), %s813_s18 }
   0x7   : > { %p200_p3 = pnand %p656_p1, %p199_p2  ;;  %p29_p4 = scmp.ge.s32.totalorder %s958_s21, 4 }
   0x8   : > { %s657_s22 = sshll.u32 (!%p200_p3), %s801_s15, 1  ;;  %p246_p5 = scmp.lt.s32.totalorder (!%p200_p3), %s805_s16, 3 }
   0x9   : > { %s960_s21 = smov (%p29_p4, %s958_s21), 0  ;;  %203 = sbr.rel (%p200_p3) target bundleno = 281 (0x119), region = 28 }
   0xa   : > { %949 = sst [smem:[#allocation2_spill]] %s960_s21  ;;  %p248_p6 = scmp.lt.s32.totalorder (!%p200_p3), %s657_s22, 3 }
   0xb   : > { %p666_p7 = scmp.ne.s32.totalorder (!%p200_p3), %s801_s15, 0 }
   0xe   : > { %s962_s16 = smov (!%p246_p5, %s805_s16), 3  ;;  %s964_s22 = smov (!%p248_p6, %s657_s22), 3 }
   0xf   : > { %s659_s23 = sshll.u32 %s962_s16, 3  ;;  %s689_s24 = sshll.u32 %s962_s16, 7 }
  0x10   : > { %s658_s25 = sshll.u32 %s964_s22, 1  ;;  %s881_s28 = scalar_lea.vmem %s945_s1, %s689_s24 }
  0x11   : > { %s252_s29 = sadd.s32 %s659_s23, %s658_s25  ;;  %s664_s30 = sshll.u32 %s962_s16, 2 }
  0x12   : > { %s660_s5 = sshll.u32 %s252_s29, 2  ;;  %s267_s6 = sadd.s32 %s664_s30, %s964_s22 }
  0x13   : > { %s886_s9 = scalar_lea.vmem %s944_s0, %s660_s5  ;;  %s665_s10 = sshll.u32 %s267_s6, 2 }
  0x14   : > { %s891_s13 = scalar_lea.vmem %s946_s2, %s665_s10  ;;  %s896_s24 = scalar_lea.vmem %s947_s3, %s962_s16 }
  0x15   : > { %s901_s22 = scalar_lea.vmem %s948_s4, %s962_s16  ;;  %281 = sbr.rel (%p666_p7) target bundleno = 28 (0x1c), region = 32 }
  0x1a   : > { %v819_v0 = vmov 0.0  }
  0x1b   : > { %282 = vst [vmem:[%s896_s24] sm:$0x1] %v819_v0  ;;  %283 = vst [vmem:[%s901_s22] sm:$0x1] %v819_v0 }
  0x1c PF: > { %v760_v1 = vld [vmem:[%s881_s28 + $0x78] sm:$0xff]   ;;  %v762_v3 = vld [vmem:[%s881_s28 + $0x70] sm:$0xff]   ;;  %v764_v5 = vld [vmem:[%s881_s28 + $0x68] sm:$0xff]  }
  0x1d   : > { %v761_v2 = vld [vmem:[%s881_s28 + $0x38] sm:$0xff]   ;;  %697 = vmatprep.subr.bf16.mxu0 %v760_v1  ;;  %v763_v4 = vld [vmem:[%s881_s28 + $0x30] sm:$0xff]   ;;  %v765_v6 = vld [vmem:[%s881_s28 + $0x28] sm:$0xff]  }
  0x1e   : > { %698 = vmatpush3.bf16.msra.mxu0 %v761_v2  ;;  %v766_v7 = vld [vmem:[%s881_s28 + $0x60] sm:$0xff]   ;;  %v768_v9 = vld [vmem:[%s881_s28 + $0x58] sm:$0xff]   ;;  %v770_v11 = vld [vmem:[%s881_s28 + $0x50] sm:$0xff]  }
  0x1f   : > { %699 = vmatprep.subr.bf16.mxu0 %v762_v3  ;;  %v767_v8 = vld [vmem:[%s881_s28 + $0x20] sm:$0xff]   ;;  %v769_v10 = vld [vmem:[%s881_s28 + $0x18] sm:$0xff]   ;;  %v771_v13 = vld [vmem:[%s881_s28 + $0x10] sm:$0xff]  }
  0x20   : > { %v778_v12 = vld [vmem:[%s886_s9 + $0x4] ss:$8 sps:$4 sm:$0xff]   ;;  %v776_v18 = vld [vmem:[%s886_s9] ss:$8 sps:$4 sm:$0xff]  }
  0x21   : > { %456 = vmatprep.mubr.bf16.mxu0 %v778_v12  ;;  %v772_v14 = vld [vmem:[%s881_s28 + $0x48] sm:$0xff]   ;;  %v774_v16 = vld [vmem:[%s881_s28 + $0x40] sm:$0xff]  }
  0x22   : > { %700 = vmatpush3.bf16.msra.mxu0 %v763_v4  ;;  %v773_v15 = vld [vmem:[%s881_s28 + $0x8] sm:$0xff]   ;;  %v775_v17 = vld [vmem:[%s881_s28] sm:$0xff]  }
  0x23   : > { %701 = vmatprep.subr.bf16.mxu0 %v764_v5  ;;  %v465_v39 = vld [vmem:[%s896_s24] sm:$0x1] }
  0x24   : > { %v475_v42 = vld [vmem:[%s901_s22] sm:$0x1] }
  0x26   : > { %702 = vmatpush3.bf16.msra.mxu0 %v765_v6 }
  0x27   : > { %703 = vmatprep.subr.bf16.mxu0 %v766_v7 }
  0x2a   : > { %704 = vmatpush3.bf16.msra.mxu0 %v767_v8 }
  0x2b   : > { %705 = vmatprep.subr.bf16.mxu0 %v768_v9 }
  0x2e   : > { %706 = vmatpush3.bf16.msra.mxu0 %v769_v10 }
  0x2f   : > { %707 = vmatprep.subr.bf16.mxu0 %v770_v11 }
  0x32   : > { %708 = vmatpush3.bf16.msra.mxu0 %v771_v13 }
  0x33   : > { %709 = vmatprep.subr.bf16.mxu0 %v772_v14 }
  0x36   : > { %710 = vmatpush3.bf16.msra.mxu0 %v773_v15 }
  0x37   : > { %711 = vmatprep.subr.bf16.mxu0 %v774_v16 }
  0x3a   : > { %712 = vmatpush3.bf16.msra.mxu0 %v775_v17 }
  0x3d   : > { %457 = vmatmul.mubr.bf16.vlgmr.msra.gmra.mxu0 %v776_v18 }
  0xfd   : > { %v713_v19 = vpop.f32.mrf.mxu0 }
  0xff   : > { %v714_v20 = vpop.f32.mrf.mxu0 }
 0x100   : > { %v715_v22 = vadd.f32 %v714_v20, %v713_v19 }
 0x101   : > { %v716_v21 = vpop.f32.mrf.mxu0 }
 0x102   : > { %v476_v25 = vmul.f32 %v715_v22, %v715_v22 }
 0x103   : > { %v717_v23 = vpop.f32.mrf.mxu0 }
 0x104   : > { %v718_v24 = vadd.f32 %v717_v23, %v716_v21 }
 0x106   : > { %v466_v26 = vadd.f32 %v718_v24, %v715_v22  ;;  %v477_v27 = vmul.f32 %v718_v24, %v718_v24  ;;  %v695_v28 = vpack.c.bf16 %v718_v24, %v715_v22 }
 0x108   : > { %v467_v29 = vrot.slane %v466_v26, 4  ;;  %v478_v30 = vadd.f32 %v477_v27, %v476_v25  ;;  %696 = vst [vmem:[%s891_s13] sm:$0xff] %v695_v28  }
 0x10a   : > { %v468_v31 = vadd.f32 %v467_v29, %v466_v26  ;;  %v479_v32 = vrot.slane %v478_v30, 4 }
 0x10c   : > { %v469_v33 = vrot.slane %v468_v31, 2  ;;  %v480_v34 = vadd.f32 %v479_v32, %v478_v30 }
 0x10e   : > { %v470_v35 = vadd.f32 %v469_v33, %v468_v31  ;;  %v481_v36 = vrot.slane %v480_v34, 2 }
 0x110   : > { %v471_v37 = vrot.slane %v470_v35, 1  ;;  %v482_v38 = vadd.f32 %v481_v36, %v480_v34 }
 0x112   : > { %v472_v40 = vadd.f32 %v471_v37, %v470_v35  ;;  %v483_v41 = vrot.slane %v482_v38, 1 }
 0x114   : > { %v473_v43 = vadd.f32 %v472_v40, %v465_v39  ;;  %v484_v44 = vadd.f32 %v483_v41, %v482_v38 }
 0x116   : > { %474 = vst [vmem:[%s896_s24] sm:$0x1] %v473_v43  ;;  %v485_v45 = vadd.f32 %v484_v44, %v475_v42 }
 0x118   : > { %486 = vst [vmem:[%s901_s22] sm:$0x1] %v485_v45 }
 0x119 PF: > { %s15_s19 = sadd.s32 1, %s817_s19   ;;  %s950_s21 = sld [smem:[#allocation2_spill]] }
 0x11a   : > { %p12_p8 = scmp.ge.s32.totalorder %s15_s19, 10   ;;  %s951_s15 = smov %s809_s17 }
 0x11b   : > { %s952_s16 = smov %s813_s18  ;;  %s953_s17 = smov %s956_s20 }
 0x11c   :  { %14 = sbr.rel (!%p12_p8) target bundleno = 3 (0x3), region = 89 }
 0x11f   : > { %s954_s18 = smov %s950_s21 }

// kernel: _lambda_.11
= control target key start
LH: loop header
LB: loop body
LE: loop exit
PB: predicated region body
PF: predicated region fallthrough
CT: control target
= control target key end

     0   :  { %s726_s12 = smov 0   ;;  %s728_s13 = smov 0   ;;  %s803_s0 = inlined_call_operand.vmem [shape: bf16[4,128,128], index: 0, kind: input, shape index: {}]   ;;  %s804_s1 = inlined_call_operand.vmem [shape: bf16[4,128,128], index: 1, kind: input, shape index: {}]   ;;  %s805_s2 = inlined_call_operand.vmem [shape: f32[1,128], index: 2, kind: input, shape index: {}]   ;;  %s806_s3 = inlined_call_operand.vmem [shape: f32[4,128,128], index: 3, kind: output, shape index: {}]  }
   0x1   :  { %s730_s14 = smov 0   ;;  %s732_s15 = smov 0  }
   0x2   :  { %s734_s16 = smov 0  }
   0x3 LB: > { %s22_s17 = sadd.s32 1, %s696_s14  ;;  %s25_s18 = sadd.s32 1, %s700_s15  ;;  %s704_s16 = sphi %s734_s16, %s13_s16   ;;  %s700_s15 = sphi %s732_s15, %s810_s15   ;;  %s696_s14 = sphi %s730_s14, %s809_s14   ;;  %s692_s13 = sphi %s728_s13, %s808_s13   ;;  %s688_s12 = sphi %s726_s12, %s807_s12  }
   0x4   : > { %p23_p0 = scmp.ge.s32.totalorder %s22_s17, 2  ;;  %p521_p1 = scmp.ge.s32.totalorder %s704_s16, 1 }
   0x5   : > { %p168_p2 = scmp.lt.s32.totalorder %s704_s16, 9 }
   0x6   : > { %s812_s17 = smov (%p23_p0, %s22_s17), 0  ;;  %s814_s18 = smov (!%p23_p0, %s25_s18), %s700_s15 }
   0x7   : > { %p169_p3 = pnand %p521_p1, %p168_p2  ;;  %p27_p4 = scmp.ge.s32.totalorder %s814_s18, 4 }
   0x8   : > { %p206_p5 = scmp.lt.s32.totalorder (!%p169_p3), %s692_s13, 3  ;;  %s522_s19 = sshll.u32 (!%p169_p3), %s688_s12, 3 }
   0x9   : > { %s816_s18 = smov (%p27_p4, %s814_s18), 0  ;;  %172 = sbr.rel (%p169_p3) target bundleno = 267 (0x10b), region = 32 }
   0xa   : > { %p208_p6 = scmp.lt.s32.totalorder (!%p169_p3), %s522_s19, 15 }
   0xe   : > { %s818_s13 = smov (!%p206_p5, %s692_s13), 3  ;;  %s820_s19 = smov (!%p208_p6, %s522_s19), 15  ;;  %v530_v12 = vld [vmem:[%s805_s2] ss:$0 sm:$0xff] }
   0xf   : > { %s545_s20 = sshll.u32 %s818_s13, 6  ;;  %s523_s21 = sshll.u32 %s818_s13, 4 }
  0x10   : > { %s759_s24 = scalar_lea.vmem %s804_s1, %s545_s20  ;;  %s761_s25 = sadd.s32 %s523_s21, %s820_s19 }
  0x11   : > { %v638_v0 = vld [vmem:[%s759_s24 + $0x38] sm:$0xff]   ;;  %v639_v1 = vld [vmem:[%s759_s24 + $0x30] sm:$0xff]   ;;  %s524_s26 = sshll.u32 %s761_s25, 2  ;;  %v640_v2 = vld [vmem:[%s759_s24 + $0x28] sm:$0xff]   ;;  %s529_s5 = sshll.u32 %s761_s25, 3 }
  0x12   : > { %558 = vmatprep.subr.bf16.mxu0 %v638_v0  ;;  %582 = vmatprep.subr.bf16.mxu1 %v638_v0  ;;  %s770_s29 = scalar_lea.vmem %s803_s0, %s524_s26  ;;  %v641_v3 = vld [vmem:[%s759_s24 + $0x20] sm:$0xff]   ;;  %v642_v6 = vld [vmem:[%s759_s24 + $0x18] sm:$0xff]   ;;  %v643_v7 = vld [vmem:[%s759_s24 + $0x10] sm:$0xff]   ;;  %s228_s8 = scalar_lea.vmem %s806_s3, %s529_s5 }
  0x13   : > { %559 = vmatpush3.bf16.msra.mxu0 %v638_v0  ;;  %590 = vmatpush3.bf16.msra.mxu1 %v638_v0  ;;  %v646_v4 = vld [vmem:[%s770_s29] sm:$0xff]   ;;  %v647_v5 = vld [vmem:[%s770_s29 + $0x10] sm:$0xff]   ;;  %v644_v8 = vld [vmem:[%s759_s24 + $0x8] sm:$0xff]  }
  0x14   : > { %560 = vmatprep.subr.bf16.mxu0 %v639_v1  ;;  %583 = vmatprep.subr.bf16.mxu1 %v639_v1  ;;  %v645_v9 = vld [vmem:[%s759_s24] sm:$0xff]   ;;  %v648_v10 = vld [vmem:[%s770_s29 + $0x8] sm:$0xff]   ;;  %v649_v11 = vld [vmem:[%s770_s29 + $0x18] sm:$0xff]  }
  0x15   : > { %574 = vmatprep.mubr.bf16.mxu0 %v646_v4  ;;  %578 = vmatprep.mubr.bf16.mxu1 %v647_v5 }
  0x17   : > { %561 = vmatpush3.bf16.msra.mxu0 %v639_v1  ;;  %591 = vmatpush3.bf16.msra.mxu1 %v639_v1 }
  0x18   : > { %562 = vmatprep.subr.bf16.mxu0 %v640_v2  ;;  %584 = vmatprep.subr.bf16.mxu1 %v640_v2 }
  0x1b   : > { %563 = vmatpush3.bf16.msra.mxu0 %v640_v2  ;;  %592 = vmatpush3.bf16.msra.mxu1 %v640_v2 }
  0x1c   : > { %564 = vmatprep.subr.bf16.mxu0 %v641_v3  ;;  %585 = vmatprep.subr.bf16.mxu1 %v641_v3 }
  0x1f   : > { %565 = vmatpush3.bf16.msra.mxu0 %v641_v3  ;;  %593 = vmatpush3.bf16.msra.mxu1 %v641_v3 }
  0x20   : > { %566 = vmatprep.subr.bf16.mxu0 %v642_v6  ;;  %586 = vmatprep.subr.bf16.mxu1 %v642_v6 }
  0x23   : > { %567 = vmatpush3.bf16.msra.mxu0 %v642_v6  ;;  %594 = vmatpush3.bf16.msra.mxu1 %v642_v6 }
  0x24   : > { %568 = vmatprep.subr.bf16.mxu0 %v643_v7  ;;  %587 = vmatprep.subr.bf16.mxu1 %v643_v7 }
  0x27   : > { %569 = vmatpush3.bf16.msra.mxu0 %v643_v7  ;;  %595 = vmatpush3.bf16.msra.mxu1 %v643_v7 }
  0x28   : > { %570 = vmatprep.subr.bf16.mxu0 %v644_v8  ;;  %588 = vmatprep.subr.bf16.mxu1 %v644_v8 }
  0x2b   : > { %571 = vmatpush3.bf16.msra.mxu0 %v644_v8  ;;  %596 = vmatpush3.bf16.msra.mxu1 %v644_v8 }
  0x2c   : > { %572 = vmatprep.subr.bf16.mxu0 %v645_v9  ;;  %589 = vmatprep.subr.bf16.mxu1 %v645_v9 }
  0x2f   : > { %573 = vmatpush3.bf16.msra.mxu0 %v645_v9  ;;  %597 = vmatpush3.bf16.msra.mxu1 %v645_v9 }
  0x32   : > { %575 = vmatmul.mubr.bf16.vlgmr.msra.gmra.mxu0 %v648_v10  ;;  %579 = vmatmul.mubr.bf16.vlgmr.msra.gmra.mxu1 %v649_v11 }
  0xf2   : > { %v576_v13 = vpop.f32.mrf.mxu0  ;;  %v580_v14 = vpop.f32.mrf.mxu1 }
  0xf3   : > { %v377_v15 = vadd.f32 %v576_v13, %v530_v12  ;;  %v393_v16 = vadd.f32 %v580_v14, %v530_v12 }
  0xf4   : > { %v368_v17 = vpop.f32.mrf.mxu0  ;;  %v384_v18 = vpop.f32.mrf.mxu1 }
  0xf5   : > { %650 = vtanh.f32 %v377_v15  ;;  %v369_v19 = vadd.f32 %v530_v12, %v368_v17  ;;  %v385_v20 = vadd.f32 %v530_v12, %v384_v18 }
  0xf6   : > { %652 = vtanh.f32 %v393_v16  ;;  %v577_v21 = vpop.f32.mrf.mxu0  ;;  %v581_v22 = vpop.f32.mrf.mxu1 }
  0xf7   : > { %654 = vtanh.f32 %v369_v19  ;;  %v380_v23 = vadd.f32 %v577_v21, %v530_v12  ;;  %v396_v24 = vadd.f32 %v581_v22, %v530_v12 }
  0xf8   : > { %656 = vtanh.f32 %v385_v20  ;;  %v371_v25 = vpop.f32.mrf.mxu0  ;;  %v387_v26 = vpop.f32.mrf.mxu1 }
  0xf9   : > { %658 = vtanh.f32 %v380_v23  ;;  %v372_v27 = vadd.f32 %v530_v12, %v371_v25  ;;  %v388_v28 = vadd.f32 %v530_v12, %v387_v26 }
  0xfa   : > { %660 = vtanh.f32 %v396_v24 }
  0xfb   : > { %662 = vtanh.f32 %v372_v27 }
  0xfc   : > { %664 = vtanh.f32 %v388_v28 }
 0x102   : > { %v651_v29 = vpop.eup %650 }
 0x103   : > { %v653_v30 = vpop.eup %652  ;;  %409 = vst [vmem:[%s228_s8 + $0x10] sm:$0xff] %v651_v29 }
 0x104   : > { %v655_v31 = vpop.eup %654  ;;  %413 = vst [vmem:[%s228_s8 + $0x30] sm:$0xff] %v653_v30 }
 0x105   : > { %v657_v32 = vpop.eup %656  ;;  %407 = vst [vmem:[%s228_s8] sm:$0xff] %v655_v31 }
 0x106   : > { %v659_v33 = vpop.eup %658  ;;  %411 = vst [vmem:[%s228_s8 + $0x20] sm:$0xff] %v657_v32 }
 0x107   : > { %v661_v34 = vpop.eup %660  ;;  %410 = vst [vmem:[%s228_s8 + $0x18] sm:$0xff] %v659_v33 }
 0x108   : > { %v663_v35 = vpop.eup %662  ;;  %414 = vst [vmem:[%s228_s8 + $0x38] sm:$0xff] %v661_v34 }
 0x109   : > { %v665_v36 = vpop.eup %664  ;;  %408 = vst [vmem:[%s228_s8 + $0x8] sm:$0xff] %v663_v35 }
 0x10a   : > { %412 = vst [vmem:[%s228_s8 + $0x28] sm:$0xff] %v665_v36 }
 0x10b PF: > { %s13_s16 = sadd.s32 1, %s704_s16   ;;  %s807_s12 = smov %s696_s14 }
 0x10c   : > { %p10_p7 = scmp.ge.s32.totalorder %s13_s16, 10   ;;  %s808_s13 = smov %s700_s15 }
 0x10d   : > { %s809_s14 = smov %s812_s17  ;;  %s810_s15 = smov %s816_s18 }
 0x10e   :  { %12 = sbr.rel (!%p10_p7) target bundleno = 3 (0x3), region = 65 }

</bundles_post_ra>
